<compile_context>
chip_gen: v5e
topology: v5e:2x2
jax: 0.10.0
libtpu: 0.0.40
codegen_flags: <defaults>
</compile_context>

<pallas_src>
import functools

import numpy as np
import jax
import jax.numpy as jnp
from jax import lax
from jax.experimental import pallas as pl
from jax.experimental.pallas import tpu as pltpu

N_BINS = 15          # matches _ECELoss(n_bins=15) default
_LANES = 128         # lane width of the bin histogram accumulator


def _ece_kernel(logits_ref, labels_ref, lower_ref, upper_ref, ece_ref, stats_ref,
                *, n_total, needs_row_mask):
    pid = pl.program_id(0)
    last = pl.num_programs(0) - 1

    @pl.when(pid == 0)
    def _init():
        stats_ref[...] = jnp.zeros_like(stats_ref)

    x = logits_ref[...]                                   # (T, C) native dtype
    labels = labels_ref[...]                              # (T, 1) int32
    t, c = x.shape

    # confidences, predictions = torch.max(logits, 1)   (first-max tie break).
    # Max / equality are done in the native dtype (monotone under the cast).
    conf = jnp.max(x, axis=1, keepdims=True)                                 # (T, 1)
    col = lax.broadcasted_iota(jnp.int32, x.shape, 1)                        # (T, C)
    pred = jnp.min(jnp.where(x == conf, col, c), axis=1, keepdims=True)      # (T, 1)
    correct_f = (pred == labels).astype(jnp.float32)                         # (T, 1)

    conf_f = conf.astype(jnp.float32)                                        # (T, 1)
    if needs_row_mask:
        # Rows of the ragged last tile past N hold unspecified data; push their
        # confidence outside every (lower, upper] bin (and kill NaN/Inf) with a
        # cheap (T,1) select instead of a (T,128) AND on every step.
        row = pid * t + lax.broadcasted_iota(jnp.int32, (t, 1), 0)
        conf_f = jnp.where(row < n_total, conf_f, jnp.float32(2.0))

    # Lane-dense bin one-hot: lane b holds bin (lower_b, upper_b]; lanes >=
    # n_bins are padded with (+inf, -inf) so they never match. Exactly the
    # `conf > lower and conf <= upper` semantics of the PyTorch loop.
    onehot = (conf_f > lower_ref[...]) & (conf_f <= upper_ref[...])          # (T, 128)

    # MXU histogram: stats[b, :] += sum_t onehot[t, b] * [conf_hi, correct, conf_lo][t, :]
    # conf is split into a bf16-exact part + residual so the per-bin sums stay
    # f32-accurate regardless of MXU input rounding; onehot / correct are 0/1.
    conf_hi = conf_f.astype(jnp.bfloat16).astype(jnp.float32)
    conf_lo = conf_f - conf_hi
    vals = jnp.concatenate([conf_hi, correct_f, conf_lo], axis=1)            # (T, 3)
    onehot_t = jnp.transpose(onehot.astype(jnp.float32))                     # (128, T)
    stats_ref[...] += jnp.dot(onehot_t, vals,
                              preferred_element_type=jnp.float32)            # (128, 3)

    @pl.when(pid == last)
    def _finalize():
        # |avg_conf_b - acc_b| * prop_b == |sum_conf_b - sum_correct_b| / N,
        # and empty bins contribute exactly 0 (mirrors `if prop_in_bin > 0`).
        sum_conf = stats_ref[:, 0:1] + stats_ref[:, 2:3]                     # (128, 1)
        sum_acc = stats_ref[:, 1:2]                                          # (128, 1)
        ece_ref[0, 0] = jnp.sum(jnp.abs(sum_conf - sum_acc)) * jnp.float32(1.0 / n_total)


def _round_up(x, m):
    return ((x + m - 1) // m) * m


def _vmem_limit_bytes():
    """Generation-aware scoped-VMEM limit (v7x has 64 MiB physical, v5e/v6e 128 MiB)."""
    cap = None
    try:
        cap = getattr(pltpu.get_tpu_info(), "vmem_capacity_bytes", None)
    except Exception:
        cap = None
    if not cap:
        cap = 64 * 1024 * 1024          # conservative fallback: assume v7x-sized VMEM
    return int(min(max(cap // 2, 16 * 1024 * 1024), 64 * 1024 * 1024))


def _choose_tile_n(n, c, itemsize, vmem_limit, max_rows=8192):
    """Largest row tile whose logits double-buffer + in-kernel (T,128)/(T,C)
    intermediates fit comfortably inside the scoped-VMEM budget."""
    budget = int(vmem_limit * 0.35)
    per_row = (2 * c * itemsize          # double-buffered logits tile
               + 2 * 4                   # double-buffered labels tile
               + 2048                    # (T,128) one-hot (mask + f32 + transposed) temps
               + (8 + itemsize) * c)     # (T,C) iota / compare / select temps
    rows = max(8, budget // per_row)
    rows = min(rows, max_rows, _round_up(max(n, 1), 8))
    if rows >= 128:
        rows = (rows // 128) * 128       # keep the MXU contraction dim lane-aligned
    else:
        rows = _round_up(rows, 8)
    return int(rows)


def ece_loss(logits, labels, n_bins=N_BINS, *, tile_n=None):
    """Pallas ECE: logits [N, C] (any float dtype), labels [N] int -> [1] float32."""
    assert n_bins <= _LANES
    n, c = logits.shape
    labels2d = labels.reshape(n, 1).astype(jnp.int32)

    vmem_limit = _vmem_limit_bytes()
    if tile_n is None:
        tile_n = _choose_tile_n(n, c, jnp.dtype(logits.dtype).itemsize, vmem_limit)
    tile_n = max(8, (int(tile_n) // 8) * 8)
    grid = (pl.cdiv(n, tile_n),)
    needs_row_mask = (n % tile_n) != 0

    # Exact bin boundaries (same construction as torch.linspace); lanes >= n_bins
    # are padded with (+inf, -inf) so they can never be selected.
    bounds = np.linspace(0.0, 1.0, n_bins + 1).astype(np.float32)
    lower = np.full((1, _LANES), np.inf, dtype=np.float32)
    upper = np.full((1, _LANES), -np.inf, dtype=np.float32)
    lower[0, :n_bins] = bounds[:-1]
    upper[0, :n_bins] = bounds[1:]

    kernel = functools.partial(_ece_kernel, n_total=n, needs_row_mask=needs_row_mask)
    out = pl.pallas_call(
        kernel,
        out_shape=jax.ShapeDtypeStruct((1, 1), jnp.float32),
        grid_spec=pltpu.PrefetchScalarGridSpec(
            num_scalar_prefetch=0,
            grid=grid,
            in_specs=[
                pl.BlockSpec((tile_n, c), lambda i: (i, 0)),   # logits tile (native dtype)
                pl.BlockSpec((tile_n, 1), lambda i: (i, 0)),   # labels tile
                pl.BlockSpec((1, _LANES), lambda i: (0, 0)),   # per-lane bin lower bounds
                pl.BlockSpec((1, _LANES), lambda i: (0, 0)),   # per-lane bin upper bounds
            ],
            out_specs=pl.BlockSpec((1, 1), lambda i: (0, 0),
                                   memory_space=pltpu.MemorySpace.SMEM),
            scratch_shapes=[pltpu.VMEM((_LANES, 3), jnp.float32)],
        ),
        compiler_params=pltpu.CompilerParams(
            # The single N axis carries the (128,3) accumulator -> reduction.
            dimension_semantics=("arbitrary",),
            vmem_limit_bytes=vmem_limit,
        ),
    )(logits, labels2d, jnp.asarray(lower), jnp.asarray(upper))
    return out.reshape(1)


def ece_reference(logits, labels, n_bins=N_BINS):
    """Pure-JAX mirror of the PyTorch _ECELoss.forward semantics (raw-logit max)."""
    conf = jnp.max(logits, axis=1)
    pred = jnp.argmax(logits, axis=1)
    acc = (pred == labels).astype(jnp.float32)
    bounds = np.linspace(0.0, 1.0, n_bins + 1).astype(np.float32)
    n = logits.shape[0]
    ece = jnp.float32(0.0)
    for b in range(n_bins):
        in_bin = (conf > float(bounds[b])) & (conf <= float(bounds[b + 1]))
        cnt = jnp.sum(in_bin.astype(jnp.float32))
        prop = cnt / n
        acc_in = jnp.sum(jnp.where(in_bin, acc, 0.0)) / jnp.maximum(cnt, 1.0)
        conf_in = jnp.sum(jnp.where(in_bin, conf, 0.0)) / jnp.maximum(cnt, 1.0)
        ece = ece + jnp.where(cnt > 0.0, jnp.abs(conf_in - acc_in) * prop, 0.0)
    return ece.reshape(1)


if __name__ == "__main__":
    key = jax.random.PRNGKey(0)
    k1, k2, k3, k4 = jax.random.split(key, 4)

    # --- Test 1: float32 logits, auto-chosen tile (single grid step) ---------
    n1, c1 = 256, 16
    # Uniform [0, 1) logits so the raw max-logit "confidences" populate the bins.
    logits1 = jax.random.uniform(k1, (n1, c1), dtype=jnp.float32)
    labels1 = jax.random.randint(k2, (n1,), 0, c1, dtype=jnp.int32)
    out1 = jax.block_until_ready(ece_loss(logits1, labels1))
    ref1 = jax.block_until_ready(ece_reference(logits1, labels1))
    assert out1.shape == (1,) and out1.dtype == jnp.float32
    np.testing.assert_allclose(np.asarray(out1), np.asarray(ref1), rtol=2e-4, atol=2e-5)

    # --- Test 2: bf16 logits streamed natively, multi-step grid with a ragged
    # last tile (N=200, tile=128 -> 2 grid steps, last tile partially masked). --
    n2, c2 = 200, 16
    logits2 = jax.random.uniform(k3, (n2, c2), dtype=jnp.float32).astype(jnp.bfloat16)
    labels2 = jax.random.randint(k4, (n2,), 0, c2, dtype=jnp.int32)
    out2 = jax.block_until_ready(ece_loss(logits2, labels2, tile_n=128))
    ref2 = jax.block_until_ready(ece_reference(logits2.astype(jnp.float32), labels2))
    np.testing.assert_allclose(np.asarray(out2), np.asarray(ref2), rtol=2e-4, atol=2e-5)

    print("KERNEL_OK")
</pallas_src>

<mosaic_0001>
module attributes {stable_mosaic.version = 11 : i64} {
  func.func @_ece_kernel(%arg0: i32, %arg1: memref<256x16xf32, #tpu.memory_space<vmem>>, %arg2: memref<256x1xi32, #tpu.memory_space<vmem>>, %arg3: memref<1x128xf32, #tpu.memory_space<vmem>>, %arg4: memref<1x128xf32, #tpu.memory_space<vmem>>, %arg5: memref<1x1xf32, #tpu.memory_space<smem>>, %arg6: memref<128x3xf32, #tpu.memory_space<vmem>>) attributes {dimension_semantics = [#tpu.dimension_semantics<arbitrary>], iteration_bounds = array<i64: 1>, scalar_prefetch = 0 : i64, scratch_operands = 1 : i64, tpu.core_type = #tpu.core_type<tc>, window_params = [{transform_indices = @transform_0, window_bounds = array<i64: 256, 16>}, {transform_indices = @transform_1, window_bounds = array<i64: 256, 1>}, {pipeline_mode = #tpu.pipeline_mode<synchronous>, transform_indices = @transform_2, window_bounds = array<i64: 1, 128>}, {pipeline_mode = #tpu.pipeline_mode<synchronous>, transform_indices = @transform_3, window_bounds = array<i64: 1, 128>}, {transform_indices = @transform_4, window_bounds = array<i64: 1, 1>}]} {
    %c0_i32 = arith.constant 0 : i32
    %0 = arith.cmpi eq, %arg0, %c0_i32 : i32
    %1 = arith.extui %0 : i1 to i32
    %c0_i32_0 = arith.constant 0 : i32
    %2 = arith.cmpi ne, %1, %c0_i32_0 : i32
    scf.if %2 {
      %cst_16 = arith.constant 0.000000e+00 : f32
      %40 = vector.broadcast %cst_16 : f32 to vector<128x3xf32>
      %c0_17 = arith.constant 0 : index
      %c0_18 = arith.constant 0 : index
      %41 = vector.load %arg6[%c0_17, %c0_18] : memref<128x3xf32, #tpu.memory_space<vmem>>, vector<128x3xf32>
      tpu.vector_store %arg6[%c0_17, %c0_18], %40 {strides = array<i32>} : memref<128x3xf32, #tpu.memory_space<vmem>>, vector<128x3xf32>,
    } else {
    }
    %c0 = arith.constant 0 : index
    %c0_1 = arith.constant 0 : index
    %3 = vector.load %arg1[%c0, %c0_1] : memref<256x16xf32, #tpu.memory_space<vmem>>, vector<256x16xf32>
    %c0_2 = arith.constant 0 : index
    %c0_3 = arith.constant 0 : index
    %4 = vector.load %arg2[%c0_2, %c0_3] : memref<256x1xi32, #tpu.memory_space<vmem>>, vector<256x1xi32>
    %cst = arith.constant dense<0xFF800000> : vector<256xf32>
    %5 = vector.multi_reduction <maximumf>, %3, %cst [1] : vector<256x16xf32> to vector<256xf32>
    %6 = vector.shape_cast %5 : vector<256xf32> to vector<256x1xf32>
    %7 = tpu.iota {dimensions = array<i32: 1>} : vector<256x16xi32>
    %8 = vector.broadcast %6 : vector<256x1xf32> to vector<256x16xf32>
    %9 = arith.cmpf oeq, %3, %8 : vector<256x16xf32>
    %c16_i32 = arith.constant 16 : i32
    %10 = vector.broadcast %c16_i32 : i32 to vector<256x16xi32>
    %11 = arith.select %9, %7, %10 : vector<256x16xi1>, vector<256x16xi32>
    %cst_4 = arith.constant dense<2147483647> : vector<256xi32>
    %12 = vector.multi_reduction <minsi>, %11, %cst_4 [1] : vector<256x16xi32> to vector<256xi32>
    %13 = vector.shape_cast %12 : vector<256xi32> to vector<256x1xi32>
    %14 = arith.cmpi eq, %13, %4 : vector<256x1xi32>
    %15 = arith.extui %14 : vector<256x1xi1> to vector<256x1xi32>
    %16 = arith.sitofp %15 : vector<256x1xi32> to vector<256x1xf32>
    %c0_5 = arith.constant 0 : index
    %c0_6 = arith.constant 0 : index
    %17 = vector.load %arg3[%c0_5, %c0_6] : memref<1x128xf32, #tpu.memory_space<vmem>>, vector<1x128xf32>
    %18 = vector.broadcast %6 : vector<256x1xf32> to vector<256x128xf32>
    %19 = vector.broadcast %17 : vector<1x128xf32> to vector<256x128xf32>
    %20 = arith.cmpf ogt, %18, %19 : vector<256x128xf32>
    %c0_7 = arith.constant 0 : index
    %c0_8 = arith.constant 0 : index
    %21 = vector.load %arg4[%c0_7, %c0_8] : memref<1x128xf32, #tpu.memory_space<vmem>>, vector<1x128xf32>
    %22 = vector.broadcast %6 : vector<256x1xf32> to vector<256x128xf32>
    %23 = vector.broadcast %21 : vector<1x128xf32> to vector<256x128xf32>
    %24 = arith.cmpf ole, %22, %23 : vector<256x128xf32>
    %25 = arith.andi %20, %24 : vector<256x128xi1>
    %26 = arith.truncf %6 : vector<256x1xf32> to vector<256x1xbf16>
    %27 = arith.extf %26 : vector<256x1xbf16> to vector<256x1xf32>
    %28 = arith.subf %6, %27 : vector<256x1xf32>
    %29 = tpu.concatenate %27, %16, %28 in 1 : vector<256x1xf32>, vector<256x1xf32>, vector<256x1xf32> -> vector<256x3xf32>
    %30 = arith.extui %25 : vector<256x128xi1> to vector<256x128xi32>
    %31 = arith.sitofp %30 : vector<256x128xi32> to vector<256x128xf32>
    %32 = tpu.transpose %31, [1, 0] : vector<256x128xf32> -> vector<128x256xf32>
    %c0_9 = arith.constant 0 : index
    %c0_10 = arith.constant 0 : index
    %33 = vector.load %arg6[%c0_9, %c0_10] : memref<128x3xf32, #tpu.memory_space<vmem>>, vector<128x3xf32>
    %cst_11 = arith.constant dense<0.000000e+00> : vector<128x3xf32>
    %34 = tpu.matmul %32, %29, %cst_11 {dimension_numbers = #tpu.dot_dimension_numbers<[1], [0], [0], [1], [0, 0, 1, 1], [], []>} : vector<128x256xf32>, vector<256x3xf32>, vector<128x3xf32> -> vector<128x3xf32>
    %35 = arith.addf %33, %34 : vector<128x3xf32>
    %c0_12 = arith.constant 0 : index
    %c0_13 = arith.constant 0 : index
    %36 = vector.load %arg6[%c0_12, %c0_13] : memref<128x3xf32, #tpu.memory_space<vmem>>, vector<128x3xf32>
    tpu.vector_store %arg6[%c0_12, %c0_13], %35 {strides = array<i32>} : memref<128x3xf32, #tpu.memory_space<vmem>>, vector<128x3xf32>,
    %c0_i32_14 = arith.constant 0 : i32
    %37 = arith.cmpi eq, %arg0, %c0_i32_14 : i32
    %38 = arith.extui %37 : i1 to i32
    %c0_i32_15 = arith.constant 0 : i32
    %39 = arith.cmpi ne, %38, %c0_i32_15 : i32
    scf.if %39 {
      %c0_16 = arith.constant 0 : index
      %c0_17 = arith.constant 0 : index
      %40 = vector.load %arg6[%c0_16, %c0_17] : memref<128x3xf32, #tpu.memory_space<vmem>>, vector<128x1xf32>
      %c0_18 = arith.constant 0 : index
      %c2 = arith.constant 2 : index
      %41 = vector.load %arg6[%c0_18, %c2] : memref<128x3xf32, #tpu.memory_space<vmem>>, vector<128x1xf32>
      %42 = arith.addf %40, %41 : vector<128x1xf32>
      %c0_19 = arith.constant 0 : index
      %c1 = arith.constant 1 : index
      %43 = vector.load %arg6[%c0_19, %c1] : memref<128x3xf32, #tpu.memory_space<vmem>>, vector<128x1xf32>
      %44 = arith.subf %42, %43 : vector<128x1xf32>
      %45 = math.absf %44 : vector<128x1xf32>
      %46 = vector.shape_cast %45 : vector<128x1xf32> to vector<1x128x1xf32>
      %cst_20 = arith.constant dense<0.000000e+00> : vector<1xf32>
      %47 = vector.multi_reduction <add>, %46, %cst_20 [1, 2] : vector<1x128x1xf32> to vector<1xf32>
      %48 = vector.shape_cast %47 : vector<1xf32> to vector<1x1x1xf32>
      %49 = vector.extract %48[0, 0, 0] : f32 from vector<1x1x1xf32>
      %cst_21 = arith.constant 3.906250e-03 : f32
      %50 = arith.mulf %49, %cst_21 : f32
      %c0_22 = arith.constant 0 : index
      %c0_23 = arith.constant 0 : index
      %51 = memref.load %arg5[%c0_22, %c0_23] : memref<1x1xf32, #tpu.memory_space<smem>>
      memref.store %50, %arg5[%c0_22, %c0_23] : memref<1x1xf32, #tpu.memory_space<smem>>
    } else {
    }
    return
  }
  func.func @transform_0(%arg0: i32) -> (i32, i32) {
    %c0_i32 = arith.constant 0 : i32
    %c0_i32_0 = arith.constant 0 : i32
    return %arg0, %c0_i32 : i32, i32
  }
  func.func @transform_1(%arg0: i32) -> (i32, i32) {
    %c0_i32 = arith.constant 0 : i32
    %c0_i32_0 = arith.constant 0 : i32
    return %arg0, %c0_i32 : i32, i32
  }
  func.func @transform_2(%arg0: i32) -> (i32, i32) {
    %c0_i32 = arith.constant 0 : i32
    %c0_i32_0 = arith.constant 0 : i32
    %c0_i32_1 = arith.constant 0 : i32
    return %c0_i32, %c0_i32_0 : i32, i32
  }
  func.func @transform_3(%arg0: i32) -> (i32, i32) {
    %c0_i32 = arith.constant 0 : i32
    %c0_i32_0 = arith.constant 0 : i32
    %c0_i32_1 = arith.constant 0 : i32
    return %c0_i32, %c0_i32_0 : i32, i32
  }
  func.func @transform_4(%arg0: i32) -> (i32, i32) {
    %c0_i32 = arith.constant 0 : i32
    %c0_i32_0 = arith.constant 0 : i32
    %c0_i32_1 = arith.constant 0 : i32
    return %c0_i32, %c0_i32_0 : i32, i32
  }
}

</mosaic_0001>

<bundles_post_ra>
// kernel: tpu_custom_call.1
= control target key start
LH: loop header
LB: loop body
LE: loop exit
PB: predicated region body
PF: predicated region fallthrough
CT: control target
= control target key end

     0   :  { %vm103_vm0 = vcmask 130048   ;;  %s3712_s0 = inlined_call_operand.vmem [shape: f32[256,16], index: 0, kind: input, shape index: {}]   ;;  %s3713_s1 = inlined_call_operand.vmem [shape: s32[256,1], index: 1, kind: input, shape index: {}]   ;;  %s3714_s2 = inlined_call_operand.vmem [shape: f32[1,128], index: 2, kind: input, shape index: {}]   ;;  %s3715_s3 = inlined_call_operand.vmem [shape: f32[1,128], index: 3, kind: input, shape index: {}]   ;;  %s3716_s4 = inlined_call_operand.hbm [shape: f32[1,1], index: 4, kind: output, shape index: {}]  }
   0x1   :  { %v2126_v0 = vld [vmem:[%s3712_s0 + $0x20] sm:$0xff]  ;;  %v2131_v1 = vld [vmem:[%s3712_s0 + $0x10] sm:$0xff]  ;;  %v2147_v6 = vld [vmem:[%s3712_s0 + $0x28] sm:$0xff] }
   0x2   :  { %v2136_v2 = vld [vmem:[%s3712_s0] sm:$0xff]  ;;  %v116_v3 = vsel %vm103_vm0, %v2126_v0, -inf  ;;  %v110_v4 = vsel %vm103_vm0, %v2131_v1, -inf  ;;  %v2152_v7 = vld [vmem:[%s3712_s0 + $0x18] sm:$0xff]  ;;  %v2157_v8 = vld [vmem:[%s3712_s0 + $0x8] sm:$0xff] }
   0x3   :  { %v104_v5 = vsel %vm103_vm0, %v2136_v2, -inf  ;;  %117 = vmax.xlane.f32.xlu2 %v116_v3  ;;  %111 = vmax.xlane.f32.xlu1 %v110_v4 }
   0x4   :  { %105 = vmax.xlane.f32.xlu0 %v104_v5 }
   0x5   :  { %9 = vsyncpa [#allocation4], 0  ;;  %v119_v9 = vsel %vm103_vm0, %v2147_v6, -inf  ;;  %v113_v10 = vsel %vm103_vm0, %v2152_v7, -inf  ;;  %v107_v11 = vsel %vm103_vm0, %v2157_v8, -inf  ;;  %v2168_v12 = vld [vmem:[%s3712_s0 + $0x40] sm:$0xff]  ;;  %v200_v3 = vlaneseq }
   0x6   :  { %v2173_v13 = vld [vmem:[%s3712_s0 + $0x38] sm:$0xff]  ;;  %v2178_v14 = vld [vmem:[%s3712_s0 + $0x30] sm:$0xff]  ;;  %v128_v15 = vsel %vm103_vm0, %v2168_v12, -inf  ;;  %v2199_v20 = vld [vmem:[%s3712_s0 + $0x48] sm:$0xff]  ;;  %s2094_s10 = smov 1   ;;  %s1770_s21 = sshll.u32 %s3716_s4, 4  ;;  %s1771_s21 = int_to_ptr.hbm [resolvable:$true] %s1770_s21 }
   0x7   :  { %v125_v16 = vsel %vm103_vm0, %v2173_v13, -inf  ;;  %v122_v17 = vsel %vm103_vm0, %v2178_v14, -inf  ;;  %v2189_v18 = vld [vmem:[%s3712_s0 + $0x58] sm:$0xff]  ;;  %v2194_v19 = vld [vmem:[%s3712_s0 + $0x50] sm:$0xff]  ;;  %v131_v23 = vsel %vm103_vm0, %v2199_v20, -inf  ;;  %v2215_v25 = vld [vmem:[%s3712_s0 + $0x68] sm:$0xff] }
   0x8   :  { %v137_v21 = vsel %vm103_vm0, %v2189_v18, -inf  ;;  %v134_v22 = vsel %vm103_vm0, %v2194_v19, -inf  ;;  %v2210_v24 = vld [vmem:[%s3712_s0 + $0x70] sm:$0xff]  ;;  %v2220_v26 = vld [vmem:[%s3712_s0 + $0x60] sm:$0xff]  ;;  %v143_v28 = vsel %vm103_vm0, %v2215_v25, -inf  ;;  %v2231_v30 = vld [vmem:[%s3712_s0 + $0x88] sm:$0xff] }
   0x9   :  { %v146_v27 = vsel %vm103_vm0, %v2210_v24, -inf  ;;  %v140_v29 = vsel %vm103_vm0, %v2220_v26, -inf  ;;  %v2236_v31 = vld [vmem:[%s3712_s0 + $0x80] sm:$0xff]  ;;  %v2241_v32 = vld [vmem:[%s3712_s0 + $0x78] sm:$0xff]  ;;  %v155_v33 = vsel %vm103_vm0, %v2231_v30, -inf  ;;  %v2262_v38 = vld [vmem:[%s3712_s0 + $0x90] sm:$0xff] }
   0xa   :  { %v152_v34 = vsel %vm103_vm0, %v2236_v31, -inf  ;;  %v149_v35 = vsel %vm103_vm0, %v2241_v32, -inf  ;;  %v2252_v36 = vld [vmem:[%s3712_s0 + $0xa0] sm:$0xff]  ;;  %v2257_v37 = vld [vmem:[%s3712_s0 + $0x98] sm:$0xff]  ;;  %v158_v41 = vsel %vm103_vm0, %v2262_v38, -inf  ;;  %v2278_v43 = vld [vmem:[%s3712_s0 + $0xb0] sm:$0xff] }
   0xb   :  { %120 = vmax.xlane.f32.xlu2 %v119_v9  ;;  %114 = vmax.xlane.f32.xlu1 %v113_v10  ;;  %v164_v39 = vsel %vm103_vm0, %v2252_v36, -inf  ;;  %v161_v40 = vsel %vm103_vm0, %v2257_v37, -inf  ;;  %v2273_v42 = vld [vmem:[%s3712_s0 + $0xf8] sm:$0xff]  ;;  %v2283_v44 = vld [vmem:[%s3712_s0 + $0xa8] sm:$0xff]  ;;  %v170_v46 = vsel %vm103_vm0, %v2278_v43, -inf  ;;  %v2294_v48 = vld [vmem:[%s3712_s0 + $0xe0] sm:$0xff] }
   0xc   :  { %108 = vmax.xlane.f32.xlu0 %v107_v11  ;;  %v197_v45 = vsel %vm103_vm0, %v2273_v42, -inf  ;;  %v167_v47 = vsel %vm103_vm0, %v2283_v44, -inf  ;;  %v2299_v49 = vld [vmem:[%s3712_s0 + $0xe8] sm:$0xff]  ;;  %v2304_v50 = vld [vmem:[%s3712_s0 + $0xf0] sm:$0xff]  ;;  %v188_v51 = vsel %vm103_vm0, %v2294_v48, -inf  ;;  %v2325_v56 = vld [vmem:[%s3712_s0 + $0xd8] sm:$0xff] }
   0xd   :  { %v191_v52 = vsel %vm103_vm0, %v2299_v49, -inf  ;;  %v194_v53 = vsel %vm103_vm0, %v2304_v50, -inf  ;;  %v2315_v54 = vld [vmem:[%s3712_s0 + $0xc8] sm:$0xff]  ;;  %v2320_v55 = vld [vmem:[%s3712_s0 + $0xd0] sm:$0xff]  ;;  %v185_v59 = vsel %vm103_vm0, %v2325_v56, -inf  ;;  %v2336_v60 = vld [vmem:[%s3712_s0 + $0xb8] sm:$0xff] }
   0xe   :  { %v179_v57 = vsel %vm103_vm0, %v2315_v54, -inf  ;;  %v182_v58 = vsel %vm103_vm0, %v2320_v55, -inf  ;;  %v2341_v61 = vld [vmem:[%s3712_s0 + $0xc0] sm:$0xff]  ;;  %v173_v62 = vsel %vm103_vm0, %v2336_v60, -inf  ;;  %v2347_v4 = vand.u32 127, %v200_v3  ;;  %s2097_s24 = smov [#allocation3]  }
   0xf   :  { %v176_v63 = vsel %vm103_vm0, %v2341_v61, -inf }
  0x13   :  { %129 = vmax.xlane.f32.xlu2 %v128_v15  ;;  %126 = vmax.xlane.f32.xlu1 %v125_v16 }
  0x14   :  { %123 = vmax.xlane.f32.xlu0 %v122_v17 }
  0x1b   :  { %138 = vmax.xlane.f32.xlu2 %v137_v21  ;;  %135 = vmax.xlane.f32.xlu1 %v134_v22 }
  0x1c   :  { %132 = vmax.xlane.f32.xlu0 %v131_v23 }
  0x23   :  { %147 = vmax.xlane.f32.xlu2 %v146_v27  ;;  %144 = vmax.xlane.f32.xlu1 %v143_v28 }
  0x24   :  { %141 = vmax.xlane.f32.xlu0 %v140_v29 }
  0x2b   :  { %156 = vmax.xlane.f32.xlu2 %v155_v33  ;;  %153 = vmax.xlane.f32.xlu1 %v152_v34 }
  0x2c   :  { %150 = vmax.xlane.f32.xlu0 %v149_v35 }
  0x33   :  { %165 = vmax.xlane.f32.xlu2 %v164_v39  ;;  %162 = vmax.xlane.f32.xlu1 %v161_v40 }
  0x34   :  { %159 = vmax.xlane.f32.xlu0 %v158_v41 }
  0x3b   :  { %198 = vmax.xlane.f32.xlu2 %v197_v45  ;;  %171 = vmax.xlane.f32.xlu1 %v170_v46 }
  0x3c   :  { %168 = vmax.xlane.f32.xlu0 %v167_v47 }
  0x43   :  { %189 = vmax.xlane.f32.xlu2 %v188_v51  ;;  %192 = vmax.xlane.f32.xlu1 %v191_v52 }
  0x44   :  { %195 = vmax.xlane.f32.xlu0 %v194_v53 }
  0x4b   :  { %180 = vmax.xlane.f32.xlu2 %v179_v57  ;;  %183 = vmax.xlane.f32.xlu1 %v182_v58 }
  0x4c   :  { %186 = vmax.xlane.f32.xlu0 %v185_v59 }
  0x53   :  { %174 = vmax.xlane.f32.xlu1 %v173_v62 }
  0x54   :  { %177 = vmax.xlane.f32.xlu0 %v176_v63 }
  0x76   :  { %v2349_v5 = vpop.xlane.xlu2 %117  ;;  %v2351_v9 = vpop.xlane.xlu1 %111 }
  0x77   :  { %3798 = vst [vmem:[#allocation6_spill] sm:$0xff] %v2349_v5  ;;  %v2353_v10 = vpop.xlane.xlu0 %105  ;;  %vm204_vm1 = vcmp.eq.f32.partialorder %v2131_v1, %v2351_v9 }
  0x78   :  { %3799 = vst [vmem:[#allocation7_spill] sm:$0xff] %v2351_v9  ;;  %v236_v11 = vsel %vm204_vm1, %v2347_v4, 16  ;;  %vm202_vm2 = vcmp.eq.f32.partialorder %v2136_v2, %v2353_v10 }
  0x79   :  { %3800 = vst [vmem:[#allocation8_spill] sm:$0xff] %v2353_v10  ;;  %v2361_v15 = vsel %vm103_vm0, %v236_v11, 2147483647  ;;  %v234_v16 = vsel %vm202_vm2, %v2347_v4, 16 }
  0x7a   :  { %v298_v17 = vshra.s32 %v2361_v15, 16  ;;  %v2366_v21 = vsel %vm103_vm0, %v234_v16, 2147483647 }
  0x7b   :  { %v268_v22 = vshra.s32 %v2366_v21, 16 }
  0x7c   :  { %v2369_v23 = vcvt.s32.f32 %v298_v17 }
  0x7d   :  { %v2371_v1 = vcvt.s32.f32 %v268_v22 }
  0x7e   :  { %v2373_v27 = vpop.xlane.xlu2 %120  ;;  %v2375_v28 = vpop.xlane.xlu1 %114  ;;  %301 = vmin.xlane.f32.xlu0 %v2369_v23 }
  0x7f   :  { %3801 = vst [vmem:[#allocation9_spill] sm:$0xff] %v2373_v27  ;;  %271 = vmin.xlane.f32.xlu2 %v2371_v1  ;;  %v2379_v2 = vpop.xlane.xlu0 %108 }
  0x80   :  { %3802 = vst [vmem:[#allocation10_spill] sm:$0xff] %v2375_v28  ;;  %vm203_vm3 = vcmp.eq.f32.partialorder %v2157_v8, %v2379_v2 }
  0x81   :  { %3803 = vst [vmem:[#allocation11_spill] sm:$0xff] %v2379_v2  ;;  %v235_v29 = vsel %vm203_vm3, %v2347_v4, 16 }
  0x82   :  { %v2385_v33 = vsel %vm103_vm0, %v235_v29, 2147483647 }
  0x83   :  { %v283_v34 = vshra.s32 %v2385_v33, 16 }
  0x85   :  { %v2388_v35 = vcvt.s32.f32 %v283_v34 }
  0x86   :  { %v2390_v39 = vpop.xlane.xlu2 %129  ;;  %v2392_v40 = vpop.xlane.xlu1 %126 }
  0x87   :  { %3804 = vst [vmem:[#allocation12_spill] sm:$0xff] %v2390_v39  ;;  %286 = vmin.xlane.f32.xlu1 %v2388_v35  ;;  %v2395_v41 = vpop.xlane.xlu0 %123  ;;  %vm210_vm2 = vcmp.eq.f32.partialorder %v2168_v12, %v2390_v39 }
  0x88   :  { %3805 = vst [vmem:[#allocation13_spill] sm:$0xff] %v2392_v40 }
  0x89   :  { %3806 = vst [vmem:[#allocation14_spill] sm:$0xff] %v2395_v41 }
  0x8e   :  { %v2397_v45 = vpop.xlane.xlu2 %138  ;;  %v2399_v8 = vpop.xlane.xlu1 %135 }
  0x8f   :  { %3807 = vst [vmem:[#allocation15_spill] sm:$0xff] %v2397_v45  ;;  %v2401_v46 = vpop.xlane.xlu0 %132  ;;  %vm213_vm10 = vcmp.eq.f32.partialorder %v2189_v18, %v2397_v45  ;;  %vm212_vm13 = vcmp.eq.f32.partialorder %v2194_v19, %v2399_v8 }
  0x90   :  { %3808 = vst [vmem:[#allocation16_spill] sm:$0xff] %v2399_v8  ;;  %vm211_vm3 = vcmp.eq.f32.partialorder %v2199_v20, %v2401_v46 }
  0x91   :  { %3809 = vst [vmem:[#allocation17_spill] sm:$0xff] %v2401_v46 }
  0x96   :  { %v2403_v47 = vpop.xlane.xlu2 %147  ;;  %v2405_v51 = vpop.xlane.xlu1 %144 }
  0x97   :  { %3810 = vst [vmem:[#allocation18_spill] sm:$0xff] %v2403_v47  ;;  %v2407_v52 = vpop.xlane.xlu0 %141  ;;  %vm216_vm4 = vcmp.eq.f32.partialorder %v2210_v24, %v2403_v47  ;;  %vm215_vm7 = vcmp.eq.f32.partialorder %v2215_v25, %v2405_v51 }
  0x98   :  { %3811 = vst [vmem:[#allocation19_spill] sm:$0xff] %v2405_v51  ;;  %v248_v53 = vsel %vm216_vm4, %v2347_v4, 16  ;;  %v247_v9 = vsel %vm215_vm7, %v2347_v4, 16  ;;  %vm214_vm11 = vcmp.eq.f32.partialorder %v2220_v26, %v2407_v52  ;;  %v245_v26 = vsel %vm213_vm10, %v2347_v4, 16 }
  0x99   :  { %3812 = vst [vmem:[#allocation20_spill] sm:$0xff] %v2407_v52  ;;  %v2413_v57 = vsel %vm103_vm0, %v248_v53, 2147483647  ;;  %v2460_v10 = vsel %vm103_vm0, %v247_v9, 2147483647 }
  0x9a   :  { %v478_v58 = vshra.s32 %v2413_v57, 16  ;;  %v463_v9 = vshra.s32 %v2460_v10, 16 }
  0x9c   :  { %v2416_v59 = vcvt.s32.f32 %v478_v58 }
  0x9e   :  { %v2418_v62 = vpop.xlane.xlu2 %156  ;;  %v2420_v63 = vpop.xlane.xlu1 %153  ;;  %481 = vmin.xlane.f32.xlu1 %v2416_v59 }
  0x9f   :  { %3813 = vst [vmem:[#allocation21_spill] sm:$0xff] %v2418_v62  ;;  %v2423_v3 = vpop.xlane.xlu0 %150 }
  0xa0   :  { %3814 = vst [vmem:[#allocation22_spill] sm:$0xff] %v2420_v63  ;;  %vm217_vm5 = vcmp.eq.f32.partialorder %v2241_v32, %v2423_v3 }
  0xa1   :  { %3815 = vst [vmem:[#allocation23_spill] sm:$0xff] %v2423_v3  ;;  %v249_v24 = vsel %vm217_vm5, %v2347_v4, 16 }
  0xa2   :  { %v2429_v11 = vsel %vm103_vm0, %v249_v24, 2147483647 }
  0xa3   :  { %v493_v16 = vshra.s32 %v2429_v11, 16 }
  0xa5   :  { %v2432_v17 = vcvt.s32.f32 %v493_v16 }
  0xa6   :  { %v2434_v22 = vpop.xlane.xlu2 %165  ;;  %v2436_v29 = vpop.xlane.xlu1 %162 }
  0xa7   :  { %3816 = vst [vmem:[#allocation24_spill] sm:$0xff] %v2432_v17  ;;  %496 = vmin.xlane.f32.xlu2 %v2432_v17  ;;  %v2439_v34 = vpop.xlane.xlu0 %159 }
  0xa8   :  { %3817 = vst [vmem:[#allocation25_spill] sm:$0xff] %v2434_v22 }
  0xa9   :  { %3818 = vst [vmem:[#allocation26_spill] sm:$0xff] %v2436_v29 }
  0xaa   :  { %3819 = vst [vmem:[#allocation27_spill] sm:$0xff] %v2439_v34 }
  0xae   :  { %v2441_v53 = vpop.xlane.xlu2 %198  ;;  %v2443_v32 = vpop.xlane.xlu1 %171 }
  0xaf   :  { %3820 = vst [vmem:[#allocation28_spill] sm:$0xff] %v2441_v53  ;;  %v2445_v58 = vpop.xlane.xlu0 %168  ;;  %vm233_vm6 = vcmp.eq.f32.partialorder %v2273_v42, %v2441_v53 }
  0xb0   :  { %3821 = vst [vmem:[#allocation29_spill] sm:$0xff] %v2443_v32  ;;  %v265_v24 = vsel %vm233_vm6, %v2347_v4, 16 }
  0xb1   :  { %3822 = vst [vmem:[#allocation30_spill] sm:$0xff] %v2445_v58  ;;  %v2453_v16 = vsel %vm103_vm0, %v265_v24, 2147483647 }
  0xb2   :  { %v733_v47 = vshra.s32 %v2453_v16, 16 }
  0xb4   :  { %v2457_v2 = vcvt.s32.f32 %v733_v47 }
  0xb6   :  { %v2462_v17 = vpop.xlane.xlu2 %189  ;;  %v2464_v42 = vpop.xlane.xlu1 %192  ;;  %736 = vmin.xlane.f32.xlu0 %v2457_v2 }
  0xb7   :  { %3823 = vst [vmem:[#allocation31_spill] sm:$0xff] %v2462_v17  ;;  %v2467_v25 = vpop.xlane.xlu0 %195  ;;  %vm231_vm8 = vcmp.eq.f32.partialorder %v2299_v49, %v2464_v42  ;;  %vm230_vm9 = vcmp.eq.f32.partialorder %v2294_v48, %v2462_v17 }
  0xb8   :  { %3824 = vst [vmem:[#allocation32_spill] sm:$0xff] %v2464_v42  ;;  %v263_v47 = vsel %vm231_vm8, %v2347_v4, 16  ;;  %vm232_vm12 = vcmp.eq.f32.partialorder %v2304_v50, %v2467_v25  ;;  %v262_v24 = vsel %vm230_vm9, %v2347_v4, 16  ;;  %v246_v50 = vsel %vm214_vm11, %v2347_v4, 16 }
  0xb9   :  { %3825 = vst [vmem:[#allocation33_spill] sm:$0xff] %v2467_v25  ;;  %v2483_v49 = vsel %vm103_vm0, %v263_v47, 2147483647  ;;  %v264_v48 = vsel %vm232_vm12, %v2347_v4, 16  ;;  %v2493_v52 = vsel %vm103_vm0, %v262_v24, 2147483647  ;;  %v2496_v42 = vcvt.s32.f32 %v463_v9 }
  0xba   :  { %v703_v17 = vshra.s32 %v2483_v49, 16  ;;  %v2488_v18 = vsel %vm103_vm0, %v264_v48, 2147483647  ;;  %3827 = vst [vmem:[#allocation35_spill] sm:$0xff] %v2493_v52  ;;  %v2503_v25 = vsel %vm103_vm0, %v245_v26, 2147483647  ;;  %vm209_vm12 = vcmp.eq.f32.partialorder %v2173_v13, %v2392_v40 }
  0xbb   :  { %3826 = vst [vmem:[#allocation34_spill] sm:$0xff] %v2488_v18  ;;  %v718_v45 = vshra.s32 %v2488_v18, 16  ;;  %v688_v24 = vshra.s32 %v2493_v52, 16  ;;  %v2511_v18 = vsel %vm103_vm0, %v246_v50, 2147483647  ;;  %v241_v13 = vsel %vm209_vm12, %v2347_v4, 16 }
  0xbc   :  { %v2498_v47 = vcvt.s32.f32 %v703_v17  ;;  %3829 = vst [vmem:[#allocation37_spill] sm:$0xff] %v2503_v25  ;;  %v448_v26 = vshra.s32 %v2511_v18, 16 }
  0xbd   :  { %v2500_v51 = vcvt.s32.f32 %v718_v45  ;;  %v433_v45 = vshra.s32 %v2503_v25, 16  ;;  %v2526_v52 = vcvt.s32.f32 %v688_v24 }
  0xbe   :  { %v2505_v48 = vpop.xlane.xlu1 %183  ;;  %466 = vmin.xlane.f32.xlu0 %v2496_v42  ;;  %706 = vmin.xlane.f32.xlu1 %v2498_v47  ;;  %v2532_v8 = vpop.xlane.xlu2 %180  ;;  %v2539_v25 = vcvt.s32.f32 %v448_v26 }
  0xbf   :  { %3828 = vst [vmem:[#allocation36_spill] sm:$0xff] %v2500_v51  ;;  %721 = vmin.xlane.f32.xlu2 %v2500_v51  ;;  %v2514_v17 = vpop.xlane.xlu0 %186  ;;  %vm228_vm14 = vcmp.eq.f32.partialorder %v2320_v55, %v2505_v48  ;;  %v244_v51 = vsel %vm212_vm13, %v2347_v4, 16  ;;  %v2534_v55 = vcvt.s32.f32 %v433_v45  ;;  %vm227_vm1 = vcmp.eq.f32.partialorder %v2315_v54, %v2532_v8  ;;  %v2561_v54 = vld [vmem:[%s3715_s3] ss:$0 sm:$0xff] }
  0xc0   :  { %3830 = vst [vmem:[#allocation38_spill] sm:$0xff] %v2505_v48  ;;  %v260_v9 = vsel %vm228_vm14, %v2347_v4, 16  ;;  %vm229_vm15 = vcmp.eq.f32.partialorder %v2325_v56, %v2514_v17  ;;  %v2542_v56 = vsel %vm103_vm0, %v244_v51, 2147483647  ;;  %v2556_v51 = vld [vmem:[%s3714_s2] ss:$0 sm:$0xff]  ;;  %vm890_vm5 = vcmp.le.f32.partialorder %v2390_v39, %v2561_v54 }
  0xc1   :  { %3831 = vst [vmem:[#allocation39_spill] sm:$0xff] %v2514_v17  ;;  %v261_v50 = vsel %vm229_vm15, %v2347_v4, 16  ;;  %v2530_v19 = vsel %vm103_vm0, %v260_v9, 2147483647  ;;  %v418_v9 = vshra.s32 %v2542_v56, 16  ;;  %v259_v26 = vsel %vm227_vm1, %v2347_v4, 16 }
  0xc2   :  { %3832 = vst [vmem:[#allocation40_spill] sm:$0xff] %v2532_v8  ;;  %v2537_v48 = vsel %vm103_vm0, %v261_v50, 2147483647  ;;  %v658_v24 = vshra.s32 %v2530_v19, 16  ;;  %vm854_vm4 = vcmp.gt.f32.partialorder %v2390_v39, %v2556_v51  ;;  %v242_v8 = vsel %vm210_vm2, %v2347_v4, 16 }
  0xc3   :  { %3833 = vst [vmem:[#allocation41_spill] sm:$0xff] %v2537_v48  ;;  %v673_v45 = vshra.s32 %v2537_v48, 16  ;;  %v2579_v48 = vsel %vm103_vm0, %v259_v26, 2147483647  ;;  %v2584_v46 = vcvt.s32.f32 %v418_v9  ;;  %vm922_vm7 = vmand %vm854_vm4, %vm890_vm5  ;;  %vm224_vm13 = vcmp.eq.f32.partialorder %v2278_v43, %v2443_v32 }
  0xc4   :  { %3834 = vst [vmem:[#allocation42_spill] sm:$0xff] %v2542_v56  ;;  %v2573_v12 = vcvt.s32.f32 %v658_v24  ;;  %v243_v56 = vsel %vm211_vm3, %v2347_v4, 16  ;;  %v2589_v24 = vsel %vm103_vm0, %v242_v8, 2147483647  ;;  %vm207_vm14 = vcmp.eq.f32.partialorder %v2147_v6, %v2373_v27 }
  0xc5   :  { %v2576_v17 = vcvt.s32.f32 %v673_v45  ;;  %3837 = vst [vmem:[#allocation45_spill] sm:$0xff] %v2579_v48  ;;  %v643_v45 = vshra.s32 %v2579_v48, 16  ;;  %v2599_v9 = vsel %vm103_vm0, %v243_v56, 2147483647  ;;  %vm208_vm15 = vcmp.eq.f32.partialorder %v2178_v14, %v2395_v41 }
  0xc6   :  { %691 = vmin.xlane.f32.xlu0 %v2526_v52  ;;  %436 = vmin.xlane.f32.xlu1 %v2534_v55  ;;  %v2582_v20 = vpop.xlane.xlu1 %174  ;;  %3839 = vst [vmem:[#allocation47_spill] sm:$0xff] %v2589_v24  ;;  %vm206_vm1 = vcmp.eq.f32.partialorder %v2126_v0, %v2349_v5  ;;  %vm222_vm2 = vcmp.eq.f32.partialorder %v2252_v36, %v2434_v22 }
  0xc7   :  { %451 = vmin.xlane.f32.xlu2 %v2539_v25  ;;  %v2567_v50 = vpop.xlane.xlu0 %177  ;;  %3836 = vst [vmem:[#allocation44_spill] sm:$0xff] %v2576_v17  ;;  %vm225_vm8 = vcmp.eq.f32.partialorder %v2336_v60, %v2582_v20  ;;  %v3763_v60 = vmov 0.0   ;;  %v2618_v48 = vcvt.s32.f32 %v643_v45  ;;  %vm223_vm3 = vcmp.eq.f32.partialorder %v2283_v44, %v2445_v58 }
  0xc8   :  { %3835 = vst [vmem:[#allocation43_spill] sm:$0xff] %v2567_v50  ;;  %vm870_vm6 = vcmp.gt.f32.partialorder %v2567_v50, %v2556_v51  ;;  %vm906_vm9 = vcmp.le.f32.partialorder %v2567_v50, %v2561_v54  ;;  %vm226_vm10 = vcmp.eq.f32.partialorder %v2341_v61, %v2567_v50  ;;  %v2607_v8 = vsel %vm922_vm7, 1.0, %v3763_v60 }
  0xc9   :  { %3838 = vst [vmem:[#allocation46_spill] sm:$0xff] %v2582_v20  ;;  %vm938_vm11 = vmand %vm870_vm6, %vm906_vm9  ;;  %v388_v20 = vshra.s32 %v2589_v24, 16  ;;  %v257_v56 = vsel %vm225_vm8, %v2347_v4, 16  ;;  %v403_v50 = vshra.s32 %v2599_v9, 16  ;;  %v258_v39 = vsel %vm226_vm10, %v2347_v4, 16 }
  0xca   :  { %3840 = vst [vmem:[#allocation48_spill] sm:$0xff] %v2607_v8  ;;  %v2610_v26 = vsel %vm938_vm11, 1.0, %v3763_v60  ;;  %v2622_v40 = vsel %vm103_vm0, %v257_v56, 2147483647  ;;  %v2627_v24 = vsel %vm103_vm0, %v258_v39, 2147483647  ;;  %vm221_vm4 = vcmp.eq.f32.partialorder %v2257_v37, %v2436_v29 }
  0xcb   :  { %3841 = vst [vmem:[#allocation49_spill] sm:$0xff] %v2610_v26  ;;  %v2624_v60 = vcvt.s32.f32 %v388_v20  ;;  %v2632_v61 = vsel %vm103_vm0, %v241_v13, 2147483647  ;;  %v613_v45 = vshra.s32 %v2622_v40, 16  ;;  %v628_v56 = vshra.s32 %v2627_v24, 16 }
  0xcc   :  { %3842 = vst [vmem:[#allocation50_spill] sm:$0xff] %v2627_v24  ;;  %v373_v39 = vshra.s32 %v2632_v61, 16  ;;  %v256_v20 = vsel %vm224_vm13, %v2347_v4, 16  ;;  %v239_v13 = vsel %vm207_vm14, %v2347_v4, 16  ;;  %v240_v26 = vsel %vm208_vm15, %v2347_v4, 16 }
  0xcd   :  { %v2650_v8 = vcvt.s32.f32 %v628_v56  ;;  %v2656_v43 = vsel %vm103_vm0, %v256_v20, 2147483647  ;;  %v2659_v6 = vsel %vm103_vm0, %v239_v13, 2147483647  ;;  %v2664_v14 = vsel %vm103_vm0, %v240_v26, 2147483647 }
  0xce   :  { %421 = vmin.xlane.f32.xlu0 %v2584_v46  ;;  %661 = vmin.xlane.f32.xlu1 %v2573_v12  ;;  %v2653_v24 = vcvt.s32.f32 %v373_v39  ;;  %v343_v56 = vshra.s32 %v2659_v6, 16  ;;  %v358_v39 = vshra.s32 %v2664_v14, 16  ;;  %v238_v26 = vsel %vm206_vm1, %v2347_v4, 16 }
  0xcf   :  { %676 = vmin.xlane.f32.xlu2 %v2576_v17  ;;  %v2629_v17 = vcvt.s32.f32 %v403_v50  ;;  %v2646_v50 = vcvt.s32.f32 %v613_v45  ;;  %v598_v45 = vshra.s32 %v2656_v43, 16  ;;  %v254_v20 = vsel %vm222_vm2, %v2347_v4, 16 }
  0xd0   :  { %v255_v0 = vsel %vm223_vm3, %v2347_v4, 16  ;;  %v2681_v32 = vcvt.s32.f32 %v343_v56  ;;  %v2684_v36 = vsel %vm103_vm0, %v238_v26, 2147483647  ;;  %v2686_v41 = vcvt.s32.f32 %v358_v39 }
  0xd1   :  { %v2679_v13 = vcvt.s32.f32 %v598_v45  ;;  %v2689_v27 = vsel %vm103_vm0, %v254_v20, 2147483647  ;;  %v2694_v44 = vsel %vm103_vm0, %v255_v0, 2147483647  ;;  %v328_v45 = vshra.s32 %v2684_v36, 16 }
  0xd2   :  { %vm220_vm5 = vcmp.eq.f32.partialorder %v2262_v38, %v2439_v34  ;;  %v568_v56 = vshra.s32 %v2689_v27, 16  ;;  %vm205_vm6 = vcmp.eq.f32.partialorder %v2152_v7, %v2375_v28  ;;  %vm861_vm7 = vcmp.gt.f32.partialorder %v2423_v3, %v2556_v51 }
  0xd3   :  { %vm897_vm8 = vcmp.le.f32.partialorder %v2423_v3, %v2561_v54  ;;  %v583_v39 = vshra.s32 %v2694_v44, 16  ;;  %v253_v26 = vsel %vm221_vm4, %v2347_v4, 16  ;;  %v252_v37 = vsel %vm220_vm5, %v2347_v4, 16 }
  0xd4   :  { %v237_v20 = vsel %vm205_vm6, %v2347_v4, 16  ;;  %vm877_vm9 = vcmp.gt.f32.partialorder %v2441_v53, %v2556_v51  ;;  %vm913_vm10 = vcmp.le.f32.partialorder %v2441_v53, %v2561_v54  ;;  %vm929_vm11 = vmand %vm861_vm7, %vm897_vm8  ;;  %v2717_v7 = vcvt.s32.f32 %v328_v45 }
  0xd5   :  { %v2719_v38 = vcvt.s32.f32 %v568_v56  ;;  %v2721_v0 = vcvt.s32.f32 %v583_v39  ;;  %v2724_v58 = vsel %vm103_vm0, %v253_v26, 2147483647  ;;  %v2727_v22 = vsel %vm103_vm0, %v252_v37, 2147483647  ;;  %vm945_vm12 = vmand %vm877_vm9, %vm913_vm10 }
  0xd6   :  { %646 = vmin.xlane.f32.xlu0 %v2618_v48  ;;  %391 = vmin.xlane.f32.xlu1 %v2624_v60  ;;  %v2732_v51 = vsel %vm103_vm0, %v237_v20, 2147483647  ;;  %v3843_v54 = vmov 0.0   ;;  %vm218_vm13 = vcmp.eq.f32.partialorder %v2236_v31, %v2420_v63  ;;  %v553_v26 = vshra.s32 %v2724_v58, 16 }
  0xd7   :  { %406 = vmin.xlane.f32.xlu2 %v2629_v17  ;;  %v2735_v45 = vsel %vm929_vm11, 1.0, %v3843_v54  ;;  %v2738_v56 = vsel %vm945_vm12, 1.0, %v3843_v54  ;;  %v538_v37 = vshra.s32 %v2727_v22, 16  ;;  %vm219_vm14 = vcmp.eq.f32.partialorder %v2231_v30, %v2418_v62 }
  0xd8   :  { %3844 = vst [vmem:[#allocation51_spill] sm:$0xff] %v2735_v45  ;;  %v313_v20 = vshra.s32 %v2732_v51, 16  ;;  %v250_v5 = vsel %vm218_vm13, %v2347_v4, 16  ;;  %v251_v29 = vsel %vm219_vm14, %v2347_v4, 16  ;;  %v2752_v28 = vcvt.s32.f32 %v553_v26 }
  0xd9   :  { %3845 = vst [vmem:[#allocation52_spill] sm:$0xff] %v2738_v56  ;;  %v2754_v53 = vcvt.s32.f32 %v538_v37  ;;  %v2759_v39 = vsel %vm103_vm0, %v250_v5, 2147483647  ;;  %v2764_v30 = vsel %vm103_vm0, %v251_v29, 2147483647  ;;  %v297_v4 = vand.u32 65535, %v2361_v15 }
  0xda   :  { %v2756_v31 = vcvt.s32.f32 %v313_v20  ;;  %v508_v26 = vshra.s32 %v2759_v39, 16  ;;  %v523_v37 = vshra.s32 %v2764_v30, 16  ;;  %v267_v15 = vand.u32 65535, %v2366_v21 }
  0xdb   :  { %v299_v5 = vcvt.s32.f32 %v297_v4  ;;  %v282_v62 = vand.u32 65535, %v2385_v33 }
  0xdc   :  { %v2774_v20 = vcvt.s32.f32 %v508_v26  ;;  %v2776_v56 = vcvt.s32.f32 %v523_v37 }
  0xdd   :  { %v284_v4 = vcvt.s32.f32 %v282_v62  ;;  %v3846_v62 = vld [vmem:[#allocation24_spill] sm:$0xff] }
  0xde   :  { %376 = vmin.xlane.f32.xlu0 %v2653_v24  ;;  %616 = vmin.xlane.f32.xlu1 %v2646_v50 }
  0xdf   :  { %631 = vmin.xlane.f32.xlu2 %v2650_v8 }
  0xe6   :  { %601 = vmin.xlane.f32.xlu0 %v2679_v13  ;;  %346 = vmin.xlane.f32.xlu1 %v2681_v32 }
  0xe7   :  { %361 = vmin.xlane.f32.xlu2 %v2686_v41 }
  0xee   :  { %331 = vmin.xlane.f32.xlu0 %v2717_v7  ;;  %571 = vmin.xlane.f32.xlu1 %v2719_v38 }
  0xef   :  { %586 = vmin.xlane.f32.xlu2 %v2721_v0 }
  0xf1   :  { %v2766_v45 = vpop.xlane.xlu0 %301 }
  0xf2   :  { %vm303_vm15 = vcmp.eq.f32.partialorder %v2369_v23, %v2766_v45  ;;  %v2779_v3 = vpop.xlane.xlu2 %271  ;;  %v269_v23 = vcvt.s32.f32 %v267_v15 }
  0xf3   :  { %v304_v29 = vsel %vm303_vm15, %v299_v5, inf  ;;  %vm273_vm0 = vcmp.eq.f32.partialorder %v2371_v1, %v2779_v3  ;;  %v477_v5 = vand.u32 65535, %v2413_v57  ;;  %v492_v1 = vand.u32 65535, %v2429_v11 }
  0xf4   :  { %v274_v26 = vsel %vm273_vm0, %v269_v23, inf  ;;  %v732_v57 = vand.u32 65535, %v2453_v16  ;;  %v702_v11 = vand.u32 65535, %v2483_v49 }
  0xf5   :  { %v479_v21 = vcvt.s32.f32 %v477_v5  ;;  %v3847_v5 = vld [vmem:[#allocation34_spill] sm:$0xff] }
  0xf6   :  { %556 = vmin.xlane.f32.xlu0 %v2752_v28  ;;  %541 = vmin.xlane.f32.xlu1 %v2754_v53 }
  0xf7   :  { %316 = vmin.xlane.f32.xlu2 %v2756_v31 }
  0xfa   :  { %v2783_v34 = vpop.xlane.xlu1 %286 }
  0xfb   :  { %vm288_vm1 = vcmp.eq.f32.partialorder %v2388_v35, %v2783_v34  ;;  %v494_v35 = vcvt.s32.f32 %v492_v1 }
  0xfc   :  { %v289_v37 = vsel %vm288_vm1, %v284_v4, inf }
  0xfe   :  { %511 = vmin.xlane.f32.xlu0 %v2774_v20  ;;  %305 = vmin.xlane.f32.xlu1 %v304_v29 }
  0xff   :  { %526 = vmin.xlane.f32.xlu2 %v2776_v56 }
 0x106   :  { %275 = vmin.xlane.f32.xlu0 %v274_v26  ;;  %v734_v26 = vcvt.s32.f32 %v732_v57 }
 0x107   :  { %290 = vmin.xlane.f32.xlu2 %v289_v37  ;;  %v462_v37 = vand.u32 65535, %v2460_v10  ;;  %v3848_v10 = vld [vmem:[#allocation36_spill] sm:$0xff] }
 0x109   :  { %v464_v16 = vcvt.s32.f32 %v462_v37 }
 0x111   :  { %v2791_v29 = vpop.xlane.xlu1 %481 }
 0x112   :  { %vm483_vm2 = vcmp.eq.f32.partialorder %v2416_v59, %v2791_v29 }
 0x113   :  { %v484_v33 = vsel %vm483_vm2, %v479_v21, inf  ;;  %v717_v21 = vand.u32 65535, %v3847_v5  ;;  %v447_v5 = vand.u32 65535, %v2511_v18 }
 0x114   :  { %485 = vmin.xlane.f32.xlu0 %v484_v33 }
 0x11a   :  { %v2796_v15 = vpop.xlane.xlu2 %496 }
 0x11b   :  { %vm498_vm3 = vcmp.eq.f32.partialorder %v3846_v62, %v2796_v15 }
 0x11c   :  { %v499_v23 = vsel %vm498_vm3, %v494_v35, inf  ;;  %v704_v35 = vcvt.s32.f32 %v702_v11  ;;  %v3850_v11 = vld [vmem:[#allocation35_spill] sm:$0xff] }
 0x11d   :  { %500 = vmin.xlane.f32.xlu1 %v499_v23  ;;  %v687_v37 = vand.u32 65535, %v3850_v11 }
 0x129   :  { %v2801_v4 = vpop.xlane.xlu0 %736 }
 0x12a   :  { %vm738_vm4 = vcmp.eq.f32.partialorder %v2457_v2, %v2801_v4  ;;  %v719_v2 = vcvt.s32.f32 %v717_v21 }
 0x12b   :  { %v739_v59 = vsel %vm738_vm4, %v734_v26, inf  ;;  %v3849_v26 = vld [vmem:[#allocation37_spill] sm:$0xff] }
 0x12c   :  { %740 = vmin.xlane.f32.xlu2 %v739_v59  ;;  %v432_v59 = vand.u32 65535, %v3849_v26  ;;  %v3852_v26 = vld [vmem:[#allocation41_spill] sm:$0xff] }
 0x131   :  { %v2808_v33 = vpop.xlane.xlu1 %706  ;;  %v2810_v1 = vpop.xlane.xlu0 %466 }
 0x132   :  { %v2812_v62 = vpop.xlane.xlu2 %721  ;;  %vm708_vm5 = vcmp.eq.f32.partialorder %v2498_v47, %v2808_v33  ;;  %vm468_vm6 = vcmp.eq.f32.partialorder %v2496_v42, %v2810_v1  ;;  %v434_v42 = vcvt.s32.f32 %v432_v59  ;;  %v672_v59 = vand.u32 65535, %v3852_v26 }
 0x133   :  { %v709_v49 = vsel %vm708_vm5, %v704_v35, inf  ;;  %vm723_vm7 = vcmp.eq.f32.partialorder %v3848_v10, %v2812_v62  ;;  %v469_v23 = vsel %vm468_vm6, %v464_v16, inf  ;;  %v689_v35 = vcvt.s32.f32 %v687_v37 }
 0x134   :  { %710 = vmin.xlane.f32.xlu0 %v709_v49  ;;  %v724_v57 = vsel %vm723_vm7, %v719_v2, inf  ;;  %470 = vmin.xlane.f32.xlu2 %v469_v23  ;;  %v449_v16 = vcvt.s32.f32 %v447_v5  ;;  %v657_v10 = vand.u32 65535, %v2530_v19  ;;  %v3851_v23 = vld [vmem:[#allocation42_spill] sm:$0xff] }
 0x135   :  { %725 = vmin.xlane.f32.xlu1 %v724_v57  ;;  %v417_v57 = vand.u32 65535, %v3851_v23  ;;  %v402_v23 = vand.u32 65535, %v2599_v9 }
 0x137   :  { %v419_v37 = vcvt.s32.f32 %v417_v57 }
 0x139   :  { %v2823_v47 = vpop.xlane.xlu1 %436  ;;  %v2825_v21 = vpop.xlane.xlu0 %691 }
 0x13a   :  { %v2827_v63 = vpop.xlane.xlu2 %451  ;;  %vm438_vm8 = vcmp.eq.f32.partialorder %v2534_v55, %v2823_v47  ;;  %vm693_vm9 = vcmp.eq.f32.partialorder %v2526_v52, %v2825_v21  ;;  %v659_v52 = vcvt.s32.f32 %v657_v10 }
 0x13b   :  { %v439_v2 = vsel %vm438_vm8, %v434_v42, inf  ;;  %vm453_vm10 = vcmp.eq.f32.partialorder %v2539_v25, %v2827_v63  ;;  %v694_v18 = vsel %vm693_vm9, %v689_v35, inf  ;;  %v674_v25 = vcvt.s32.f32 %v672_v59  ;;  %v3853_v42 = vld [vmem:[#allocation44_spill] sm:$0xff] }
 0x13c   :  { %440 = vmin.xlane.f32.xlu0 %v439_v2  ;;  %v454_v49 = vsel %vm453_vm10, %v449_v16, inf  ;;  %695 = vmin.xlane.f32.xlu2 %v694_v18  ;;  %v3854_v2 = vld [vmem:[#allocation47_spill] sm:$0xff] }
 0x13d   :  { %455 = vmin.xlane.f32.xlu1 %v454_v49  ;;  %v387_v18 = vand.u32 65535, %v3854_v2  ;;  %v3855_v49 = vld [vmem:[#allocation45_spill] sm:$0xff] }
 0x13e   :  { %v642_v10 = vand.u32 65535, %v3855_v49 }
 0x140   :  { %v644_v26 = vcvt.s32.f32 %v642_v10 }
 0x141   :  { %v2838_v55 = vpop.xlane.xlu1 %661  ;;  %v2840_v11 = vpop.xlane.xlu0 %421 }
 0x142   :  { %v2842_v5 = vpop.xlane.xlu2 %676  ;;  %vm663_vm11 = vcmp.eq.f32.partialorder %v2573_v12, %v2838_v55  ;;  %vm423_vm12 = vcmp.eq.f32.partialorder %v2584_v46, %v2840_v11  ;;  %v389_v46 = vcvt.s32.f32 %v387_v18 }
 0x143   :  { %v664_v19 = vsel %vm663_vm11, %v659_v52, inf  ;;  %vm678_vm13 = vcmp.eq.f32.partialorder %v3853_v42, %v2842_v5  ;;  %v424_v35 = vsel %vm423_vm12, %v419_v37, inf  ;;  %v404_v52 = vcvt.s32.f32 %v402_v23 }
 0x144   :  { %665 = vmin.xlane.f32.xlu0 %v664_v19  ;;  %v679_v16 = vsel %vm678_vm13, %v674_v25, inf  ;;  %425 = vmin.xlane.f32.xlu2 %v424_v35  ;;  %v612_v19 = vand.u32 65535, %v2622_v40  ;;  %v372_v42 = vand.u32 65535, %v2632_v61  ;;  %v3856_v35 = vld [vmem:[#allocation50_spill] sm:$0xff]  ;;  %v342_v23 = vand.u32 65535, %v2659_v6 }
 0x145   :  { %680 = vmin.xlane.f32.xlu1 %v679_v16  ;;  %v627_v16 = vand.u32 65535, %v3856_v35 }
 0x146   :  { %v374_v18 = vcvt.s32.f32 %v372_v42  ;;  %v582_v42 = vand.u32 65535, %v2694_v44 }
 0x149   :  { %v2853_v12 = vpop.xlane.xlu1 %391  ;;  %v2855_v57 = vpop.xlane.xlu0 %646 }
 0x14a   :  { %v2857_v59 = vpop.xlane.xlu2 %406  ;;  %vm393_vm14 = vcmp.eq.f32.partialorder %v2624_v60, %v2853_v12  ;;  %vm648_vm15 = vcmp.eq.f32.partialorder %v2618_v48, %v2855_v57  ;;  %v614_v48 = vcvt.s32.f32 %v612_v19  ;;  %v327_v19 = vand.u32 65535, %v2684_v36 }
 0x14b   :  { %v394_v37 = vsel %vm393_vm14, %v389_v46, inf  ;;  %vm408_vm0 = vcmp.eq.f32.partialorder %v2629_v17, %v2857_v59  ;;  %v649_v9 = vsel %vm648_vm15, %v644_v26, inf  ;;  %v629_v17 = vcvt.s32.f32 %v627_v16 }
 0x14c   :  { %395 = vmin.xlane.f32.xlu0 %v394_v37  ;;  %v409_v25 = vsel %vm408_vm0, %v404_v52, inf  ;;  %650 = vmin.xlane.f32.xlu2 %v649_v9  ;;  %v597_v46 = vand.u32 65535, %v2656_v43  ;;  %v357_v26 = vand.u32 65535, %v2664_v14  ;;  %v329_v16 = vcvt.s32.f32 %v327_v19 }
 0x14d   :  { %410 = vmin.xlane.f32.xlu1 %v409_v25  ;;  %v567_v25 = vand.u32 65535, %v2689_v27 }
 0x14e   :  { %v599_v37 = vcvt.s32.f32 %v597_v46  ;;  %v507_v46 = vand.u32 65535, %v2759_v39 }
 0x151   :  { %v2868_v60 = vpop.xlane.xlu1 %616  ;;  %v2870_v2 = vpop.xlane.xlu0 %376 }
 0x152   :  { %v2872_v49 = vpop.xlane.xlu2 %631  ;;  %vm618_vm1 = vcmp.eq.f32.partialorder %v2646_v50, %v2868_v60  ;;  %vm378_vm2 = vcmp.eq.f32.partialorder %v2653_v24, %v2870_v2  ;;  %v344_v24 = vcvt.s32.f32 %v342_v23 }
 0x153   :  { %v619_v40 = vsel %vm618_vm1, %v614_v48, inf  ;;  %vm633_vm3 = vcmp.eq.f32.partialorder %v2650_v8, %v2872_v49  ;;  %v379_v61 = vsel %vm378_vm2, %v374_v18, inf  ;;  %v359_v8 = vcvt.s32.f32 %v357_v26 }
 0x154   :  { %620 = vmin.xlane.f32.xlu0 %v619_v40  ;;  %v634_v10 = vsel %vm633_vm3, %v629_v17, inf  ;;  %380 = vmin.xlane.f32.xlu2 %v379_v61  ;;  %v537_v18 = vand.u32 65535, %v2727_v22  ;;  %v552_v17 = vand.u32 65535, %v2724_v58  ;;  %v312_v40 = vand.u32 65535, %v2732_v51 }
 0x155   :  { %635 = vmin.xlane.f32.xlu1 %v634_v10  ;;  %v308_v26 = vcvt.f32.s32 %v2766_v45 }
 0x156   :  { %v554_v10 = vcvt.s32.f32 %v552_v17 }
 0x159   :  { %v2883_v50 = vpop.xlane.xlu1 %346  ;;  %v2885_v52 = vpop.xlane.xlu0 %601 }
 0x15a   :  { %v2887_v9 = vpop.xlane.xlu2 %361  ;;  %vm348_vm4 = vcmp.eq.f32.partialorder %v2681_v32, %v2883_v50  ;;  %vm603_vm5 = vcmp.eq.f32.partialorder %v2679_v13, %v2885_v52  ;;  %v569_v13 = vcvt.s32.f32 %v567_v25  ;;  %v293_v25 = vcvt.f32.s32 %v2783_v34  ;;  %v86_v34 = vld [vmem:[%s3713_s1 + $0x78] sm:$0xff] }
 0x15b   :  { %v349_v6 = vsel %vm348_vm4, %v344_v24, inf  ;;  %vm363_vm6 = vcmp.eq.f32.partialorder %v2686_v41, %v2887_v9  ;;  %v604_v43 = vsel %vm603_vm5, %v599_v37, inf  ;;  %v584_v41 = vcvt.s32.f32 %v582_v42 }
 0x15c   :  { %350 = vmin.xlane.f32.xlu0 %v349_v6  ;;  %v364_v14 = vsel %vm363_vm6, %v359_v8, inf  ;;  %605 = vmin.xlane.f32.xlu2 %v604_v43  ;;  %v522_v24 = vand.u32 65535, %v2764_v30  ;;  %v509_v8 = vcvt.s32.f32 %v507_v46  ;;  %v278_v30 = vcvt.f32.s32 %v2779_v3 }
 0x15d   :  { %365 = vmin.xlane.f32.xlu1 %v364_v14 }
 0x15e   :  { %v279_v42 = vshll.u32 %v278_v30, 16 }
 0x161   :  { %v2898_v32 = vpop.xlane.xlu1 %571  ;;  %v2900_v35 = vpop.xlane.xlu0 %331 }
 0x162   :  { %v2902_v48 = vpop.xlane.xlu2 %586  ;;  %vm573_vm7 = vcmp.eq.f32.partialorder %v2719_v38, %v2898_v32  ;;  %vm333_vm8 = vcmp.eq.f32.partialorder %v2717_v7, %v2900_v35  ;;  %v539_v7 = vcvt.s32.f32 %v537_v18 }
 0x163   :  { %v574_v27 = vsel %vm573_vm7, %v569_v13, inf  ;;  %vm588_vm9 = vcmp.eq.f32.partialorder %v2721_v0, %v2902_v48  ;;  %v334_v36 = vsel %vm333_vm8, %v329_v16, inf  ;;  %v314_v0 = vcvt.s32.f32 %v312_v40 }
 0x164   :  { %575 = vmin.xlane.f32.xlu0 %v574_v27  ;;  %v589_v44 = vsel %vm588_vm9, %v584_v41, inf  ;;  %335 = vmin.xlane.f32.xlu2 %v334_v36  ;;  %v294_v41 = vshll.u32 %v293_v25, 16  ;;  %v743_v40 = vcvt.f32.s32 %v2801_v4  ;;  %v713_v4 = vcvt.f32.s32 %v2808_v33  ;;  %v85_v33 = vld [vmem:[%s3713_s1 + $0x70] sm:$0xff] }
 0x165   :  { %590 = vmin.xlane.f32.xlu1 %v589_v44  ;;  %v503_v44 = vcvt.f32.s32 %v2796_v15 }
 0x167   :  { %v504_v17 = vshll.u32 %v503_v44, 16 }
 0x169   :  { %v2913_v38 = vpop.xlane.xlu1 %541  ;;  %v2915_v61 = vpop.xlane.xlu0 %556 }
 0x16a   :  { %v2917_v23 = vpop.xlane.xlu2 %316  ;;  %vm543_vm10 = vcmp.eq.f32.partialorder %v2754_v53, %v2913_v38  ;;  %vm558_vm11 = vcmp.eq.f32.partialorder %v2752_v28, %v2915_v61  ;;  %v309_v28 = vshll.u32 %v308_v26, 16  ;;  %v473_v26 = vcvt.f32.s32 %v2810_v1 }
 0x16b   :  { %v544_v22 = vsel %vm543_vm10, %v539_v7, inf  ;;  %vm318_vm12 = vcmp.eq.f32.partialorder %v2756_v31, %v2917_v23  ;;  %v559_v58 = vsel %vm558_vm11, %v554_v10, inf  ;;  %v524_v31 = vcvt.s32.f32 %v522_v24 }
 0x16c   :  { %545 = vmin.xlane.f32.xlu0 %v544_v22  ;;  %v319_v51 = vsel %vm318_vm12, %v314_v0, inf  ;;  %560 = vmin.xlane.f32.xlu2 %v559_v58  ;;  %v744_v0 = vshll.u32 %v743_v40, 16  ;;  %v488_v58 = vcvt.f32.s32 %v2791_v29  ;;  %v474_v30 = vshll.u32 %v473_v26, 16  ;;  %v99_v26 = vld [vmem:[%s3713_s1 + $0xe0] sm:$0xff] }
 0x16d   :  { %320 = vmin.xlane.f32.xlu1 %v319_v51  ;;  %v102_v51 = vld [vmem:[%s3713_s1 + $0xf8] sm:$0xff] }
 0x16e   :  { %v489_v24 = vshll.u32 %v488_v58, 16 }
 0x171   :  { %v306_v53 = vpop.xlane.xlu1 %305  ;;  %v2928_v37 = vpop.xlane.xlu0 %511 }
 0x172   :  { %v2930_v6 = vpop.xlane.xlu2 %526  ;;  %v307_v43 = vcvt.f32.s32 %v306_v53  ;;  %vm513_vm13 = vcmp.eq.f32.partialorder %v2774_v20, %v2928_v37  ;;  %v728_v53 = vcvt.f32.s32 %v2812_v62 }
 0x173   :  { %vm528_vm14 = vcmp.eq.f32.partialorder %v2776_v56, %v2930_v6  ;;  %v514_v39 = vsel %vm513_vm13, %v509_v8, inf }
 0x174   :  { %v2936_v14 = vadd.s32 %v309_v28, %v307_v43  ;;  %v529_v45 = vsel %vm528_vm14, %v524_v31, inf  ;;  %515 = vmin.xlane.f32.xlu2 %v514_v39  ;;  %v729_v62 = vshll.u32 %v728_v53, 16 }
 0x175   :  { %530 = vmin.xlane.f32.xlu1 %v529_v45  ;;  %v714_v45 = vshll.u32 %v713_v4, 16 }
 0x179   :  { %v276_v19 = vpop.xlane.xlu0 %275 }
 0x17a   :  { %v291_v13 = vpop.xlane.xlu2 %290  ;;  %v277_v16 = vcvt.f32.s32 %v276_v19 }
 0x17b   :  { %v292_v27 = vcvt.f32.s32 %v291_v13  ;;  %v84_v13 = vld [vmem:[%s3713_s1 + $0x68] sm:$0xff] }
 0x17c   :  { %v2940_v20 = vadd.s32 %v279_v42, %v277_v16  ;;  %v100_v16 = vld [vmem:[%s3713_s1 + $0xe8] sm:$0xff] }
 0x17d   :  { %v2942_v36 = vadd.s32 %v294_v41, %v292_v27  ;;  %v101_v41 = vld [vmem:[%s3713_s1 + $0xf0] sm:$0xff] }
 0x187   :  { %v486_v7 = vpop.xlane.xlu0 %485 }
 0x188   :  { %v487_v46 = vcvt.f32.s32 %v486_v7 }
 0x18a   :  { %v490_v43 = vadd.s32 %v489_v24, %v487_v46  ;;  %v83_v24 = vld [vmem:[%s3713_s1 + $0x60] sm:$0xff] }
 0x18c   :  { %vm760_vm1 = vcmp.eq.s32.totalorder %v490_v43, %v85_v33  ;;  %v428_v43 = vcvt.f32.s32 %v2840_v11 }
 0x18d   :  { %v1794_v7 = vsel %vm760_vm1, 1.0, %v3843_v54 }
 0x190   :  { %v501_v56 = vpop.xlane.xlu1 %500 }
 0x191   :  { %v502_v18 = vcvt.f32.s32 %v501_v56 }
 0x193   :  { %v505_v3 = vadd.s32 %v504_v17, %v502_v18  ;;  %v698_v18 = vcvt.f32.s32 %v2825_v21  ;;  %v458_v17 = vcvt.f32.s32 %v2827_v63  ;;  %v443_v63 = vcvt.f32.s32 %v2823_v47 }
 0x195   :  { %vm761_vm15 = vcmp.eq.s32.totalorder %v505_v3, %v86_v34  ;;  %v459_v46 = vshll.u32 %v458_v17, 16  ;;  %v444_v47 = vshll.u32 %v443_v63, 16 }
 0x196   :  { %v1795_v8 = vsel %vm761_vm15, 1.0, %v3843_v54 }
 0x19f   :  { %v741_v10 = vpop.xlane.xlu2 %740 }
 0x1a0   :  { %v742_v22 = vcvt.f32.s32 %v741_v10 }
 0x1a2   :  { %v745_v15 = vadd.s32 %v744_v0, %v742_v22 }
 0x1a4   :  { %vm777_vm0 = vcmp.eq.s32.totalorder %v745_v15, %v102_v51  ;;  %v699_v51 = vshll.u32 %v698_v18, 16 }
 0x1a5   :  { %v1811_v28 = vsel %vm777_vm0, 1.0, %v3843_v54 }
 0x1a6   :  { %v1883_v29 = vpack.i.bf16 %v1811_v28, %v1795_v8 }
 0x1a7   :  { %v471_v31 = vpop.xlane.xlu2 %470  ;;  %v711_v39 = vpop.xlane.xlu0 %710 }
 0x1a8   :  { %v726_v25 = vpop.xlane.xlu1 %725  ;;  %v472_v1 = vcvt.f32.s32 %v471_v31  ;;  %v712_v19 = vcvt.f32.s32 %v711_v39  ;;  %1884 = vrot.lane.b32.xlu0 %v1883_v29, %s2094_s10  ;;  %v668_v29 = vcvt.f32.s32 %v2838_v55  ;;  %v683_v31 = vcvt.f32.s32 %v2842_v5  ;;  %v82_v55 = vld [vmem:[%s3713_s1 + $0x58] sm:$0xff] }
 0x1a9   :  { %v727_v42 = vcvt.f32.s32 %v726_v25 }
 0x1aa   :  { %v475_v27 = vadd.s32 %v474_v30, %v472_v1  ;;  %v715_v56 = vadd.s32 %v714_v45, %v712_v19  ;;  %v669_v19 = vshll.u32 %v668_v29, 16  ;;  %v623_v29 = vcvt.f32.s32 %v2868_v60  ;;  %v79_v60 = vld [vmem:[%s3713_s1 + $0x40] sm:$0xff] }
 0x1ab   :  { %v730_v44 = vadd.s32 %v729_v62, %v727_v42  ;;  %v429_v62 = vshll.u32 %v428_v43, 16  ;;  %v383_v43 = vcvt.f32.s32 %v2870_v2 }
 0x1ac   :  { %vm759_vm2 = vcmp.eq.s32.totalorder %v475_v27, %v84_v13  ;;  %vm775_vm3 = vcmp.eq.s32.totalorder %v715_v56, %v100_v16  ;;  %v684_v16 = vshll.u32 %v683_v31, 16  ;;  %v97_v27 = vld [vmem:[%s3713_s1 + $0xd0] sm:$0xff]  ;;  %v98_v56 = vld [vmem:[%s3713_s1 + $0xd8] sm:$0xff] }
 0x1ad   :  { %vm776_vm4 = vcmp.eq.s32.totalorder %v730_v44, %v101_v41  ;;  %v1793_v40 = vsel %vm759_vm2, 1.0, %v3843_v54  ;;  %v1809_v3 = vsel %vm775_vm3, 1.0, %v3843_v54  ;;  %v81_v41 = vld [vmem:[%s3713_s1 + $0x50] sm:$0xff] }
 0x1ae   :  { %v1810_v34 = vsel %vm776_vm4, 1.0, %v3843_v54  ;;  %v1893_v10 = vpack.i.bf16 %v1809_v3, %v1793_v40  ;;  %v653_v40 = vcvt.f32.s32 %v2855_v57  ;;  %v413_v3 = vcvt.f32.s32 %v2857_v59 }
 0x1af   :  { %v696_v0 = vpop.xlane.xlu2 %695  ;;  %v441_v22 = vpop.xlane.xlu0 %440  ;;  %v1888_v58 = vpack.i.bf16 %v1810_v34, %v1794_v7  ;;  %v398_v59 = vcvt.f32.s32 %v2853_v12 }
 0x1b0   :  { %v456_v15 = vpop.xlane.xlu1 %455  ;;  %v697_v21 = vcvt.f32.s32 %v696_v0  ;;  %1894 = vrot.lane.b32.xlu2 %v1893_v10, %s2094_s10  ;;  %v442_v28 = vcvt.f32.s32 %v441_v22 }
 0x1b1   :  { %v457_v4 = vcvt.f32.s32 %v456_v15  ;;  %1889 = vrot.lane.b32.xlu1 %v1888_v58, %s2094_s10  ;;  %v399_v12 = vshll.u32 %v398_v59, 16 }
 0x1b2   :  { %v700_v53 = vadd.s32 %v699_v51, %v697_v21  ;;  %v445_v30 = vadd.s32 %v444_v47, %v442_v28  ;;  %v654_v21 = vshll.u32 %v653_v40, 16  ;;  %v638_v47 = vcvt.f32.s32 %v2872_v49 }
 0x1b3   :  { %v460_v8 = vadd.s32 %v459_v46, %v457_v4  ;;  %v414_v46 = vshll.u32 %v413_v3, 16 }
 0x1b4   :  { %vm774_vm5 = vcmp.eq.s32.totalorder %v700_v53, %v99_v26  ;;  %vm757_vm7 = vcmp.eq.s32.totalorder %v445_v30, %v82_v55  ;;  %v96_v26 = vld [vmem:[%s3713_s1 + $0xc8] sm:$0xff] }
 0x1b5   :  { %vm758_vm6 = vcmp.eq.s32.totalorder %v460_v8, %v83_v24  ;;  %v1808_v39 = vsel %vm774_vm5, 1.0, %v3843_v54  ;;  %v1791_v10 = vsel %vm757_vm7, 1.0, %v3843_v54  ;;  %v80_v24 = vld [vmem:[%s3713_s1 + $0x48] sm:$0xff] }
 0x1b6   :  { %v1792_v45 = vsel %vm758_vm6, 1.0, %v3843_v54 }
 0x1b7   :  { %v426_v33 = vpop.xlane.xlu2 %425  ;;  %v666_v25 = vpop.xlane.xlu0 %665  ;;  %v1898_v1 = vpack.i.bf16 %v1808_v39, %v1792_v45 }
 0x1b8   :  { %v681_v11 = vpop.xlane.xlu1 %680  ;;  %v427_v42 = vcvt.f32.s32 %v426_v33  ;;  %v667_v13 = vcvt.f32.s32 %v666_v25 }
 0x1b9   :  { %v682_v5 = vcvt.f32.s32 %v681_v11  ;;  %1899 = vrot.lane.b32.xlu0 %v1898_v1, %s2094_s10  ;;  %v624_v1 = vshll.u32 %v623_v29, 16  ;;  %v639_v11 = vshll.u32 %v638_v47, 16 }
 0x1ba   :  { %v430_v44 = vadd.s32 %v429_v62, %v427_v42  ;;  %v670_v18 = vadd.s32 %v669_v19, %v667_v13  ;;  %v384_v19 = vshll.u32 %v383_v43, 16  ;;  %v78_v42 = vld [vmem:[%s3713_s1 + $0x38] sm:$0xff] }
 0x1bb   :  { %v685_v17 = vadd.s32 %v684_v16, %v682_v5  ;;  %v94_v13 = vld [vmem:[%s3713_s1 + $0xb8] sm:$0xff]  ;;  %v95_v16 = vld [vmem:[%s3713_s1 + $0xc0] sm:$0xff] }
 0x1bc   :  { %vm756_vm8 = vcmp.eq.s32.totalorder %v430_v44, %v81_v41  ;;  %vm772_vm9 = vcmp.eq.s32.totalorder %v670_v18, %v97_v27  ;;  %v368_v44 = vcvt.f32.s32 %v2887_v9  ;;  %v353_v9 = vcvt.f32.s32 %v2883_v50 }
 0x1bd   :  { %vm773_vm10 = vcmp.eq.s32.totalorder %v685_v17, %v98_v56  ;;  %v1790_v7 = vsel %vm756_vm8, 1.0, %v3843_v54  ;;  %v1806_v34 = vsel %vm772_vm9, 1.0, %v3843_v54  ;;  %v608_v56 = vcvt.f32.s32 %v2885_v52 }
 0x1be   :  { %v1807_v0 = vsel %vm773_vm10, 1.0, %v3843_v54  ;;  %v1908_v22 = vpack.i.bf16 %v1806_v34, %v1790_v7  ;;  %v354_v50 = vshll.u32 %v353_v9, 16  ;;  %v518_v9 = vcvt.f32.s32 %v2928_v37  ;;  %v72_v37 = vld [vmem:[%s3713_s1 + $0x8] sm:$0xff] }
 0x1bf   :  { %v651_v58 = vpop.xlane.xlu2 %650  ;;  %v396_v51 = vpop.xlane.xlu0 %395  ;;  %v1903_v15 = vpack.i.bf16 %v1807_v0, %v1791_v10 }
 0x1c0   :  { %v411_v63 = vpop.xlane.xlu1 %410  ;;  %v652_v57 = vcvt.f32.s32 %v651_v58  ;;  %1909 = vrot.lane.b32.xlu1 %v1908_v22, %s2094_s10  ;;  %v397_v28 = vcvt.f32.s32 %v396_v51  ;;  %v609_v22 = vshll.u32 %v608_v56, 16  ;;  %v369_v51 = vshll.u32 %v368_v44, 16 }
 0x1c1   :  { %v412_v4 = vcvt.f32.s32 %v411_v63  ;;  %1904 = vrot.lane.b32.xlu2 %v1903_v15, %s2094_s10  ;;  %v77_v63 = vld [vmem:[%s3713_s1 + $0x30] sm:$0xff] }
 0x1c2   :  { %v655_v53 = vadd.s32 %v654_v21, %v652_v57  ;;  %v400_v45 = vadd.s32 %v399_v12, %v397_v28  ;;  %v93_v21 = vld [vmem:[%s3713_s1 + $0xb0] sm:$0xff] }
 0x1c3   :  { %v415_v8 = vadd.s32 %v414_v46, %v412_v4  ;;  %v578_v4 = vcvt.f32.s32 %v2898_v32  ;;  %v76_v32 = vld [vmem:[%s3713_s1 + $0x28] sm:$0xff] }
 0x1c4   :  { %vm771_vm11 = vcmp.eq.s32.totalorder %v655_v53, %v96_v26  ;;  %vm754_vm13 = vcmp.eq.s32.totalorder %v400_v45, %v79_v60  ;;  %v338_v26 = vcvt.f32.s32 %v2900_v35 }
 0x1c5   :  { %vm755_vm12 = vcmp.eq.s32.totalorder %v415_v8, %v80_v24  ;;  %v1805_v31 = vsel %vm771_vm11, 1.0, %v3843_v54  ;;  %v1788_v40 = vsel %vm754_vm13, 1.0, %v3843_v54  ;;  %v593_v24 = vcvt.f32.s32 %v2902_v48 }
 0x1c6   :  { %v1789_v39 = vsel %vm755_vm12, 1.0, %v3843_v54  ;;  %v579_v47 = vshll.u32 %v578_v4, 16  ;;  %vm747_vm12 = vcmp.eq.s32.totalorder %v2942_v36, %v72_v37  ;;  %v3123_v36 = vld [vmem:[%s3714_s2] ss:$0 sm:$0xff]  ;;  %s2095_s2 = smov 127  }
 0x1c7   :  { %v381_v30 = vpop.xlane.xlu2 %380  ;;  %v621_v33 = vpop.xlane.xlu0 %620  ;;  %v1913_v25 = vpack.i.bf16 %v1805_v31, %v1789_v39  ;;  %v339_v31 = vshll.u32 %v338_v26, 16 }
 0x1c8   :  { %v636_v2 = vpop.xlane.xlu1 %635  ;;  %v382_v62 = vcvt.f32.s32 %v381_v30  ;;  %v622_v55 = vcvt.f32.s32 %v621_v33  ;;  %v594_v30 = vshll.u32 %v593_v24, 16  ;;  %v75_v33 = vld [vmem:[%s3713_s1 + $0x20] sm:$0xff] }
 0x1c9   :  { %v637_v49 = vcvt.f32.s32 %v636_v2  ;;  %1914 = vrot.lane.b32.xlu0 %v1913_v25, %s2094_s10  ;;  %v91_v25 = vld [vmem:[%s3713_s1 + $0xa0] sm:$0xff] }
 0x1ca   :  { %v385_v5 = vadd.s32 %v384_v19, %v382_v62  ;;  %v625_v41 = vadd.s32 %v624_v1, %v622_v55  ;;  %v92_v1 = vld [vmem:[%s3713_s1 + $0xa8] sm:$0xff]  ;;  %v548_v62 = vcvt.f32.s32 %v2913_v38  ;;  %v563_v55 = vcvt.f32.s32 %v2915_v61  ;;  %v73_v38 = vld [vmem:[%s3713_s1 + $0x10] sm:$0xff] }
 0x1cb   :  { %v640_v27 = vadd.s32 %v639_v11, %v637_v49  ;;  %v323_v11 = vcvt.f32.s32 %v2917_v23  ;;  %vm748_vm7 = vcmp.eq.s32.totalorder %v2936_v14, %v73_v38 }
 0x1cc   :  { %vm753_vm14 = vcmp.eq.s32.totalorder %v385_v5, %v78_v42  ;;  %vm769_vm15 = vcmp.eq.s32.totalorder %v625_v41, %v94_v13  ;;  %v549_v56 = vshll.u32 %v548_v62, 16  ;;  %v564_v44 = vshll.u32 %v563_v55, 16 }
 0x1cd   :  { %vm770_vm0 = vcmp.eq.s32.totalorder %v640_v27, %v95_v16  ;;  %v1787_v18 = vsel %vm753_vm14, 1.0, %v3843_v54  ;;  %v1803_v17 = vsel %vm769_vm15, 1.0, %v3843_v54 }
 0x1ce   :  { %v1804_v3 = vsel %vm770_vm0, 1.0, %v3843_v54  ;;  %v1923_v7 = vpack.i.bf16 %v1803_v17, %v1787_v18 }
 0x1cf   :  { %v606_v34 = vpop.xlane.xlu2 %605  ;;  %v351_v10 = vpop.xlane.xlu0 %350  ;;  %v1918_v0 = vpack.i.bf16 %v1804_v3, %v1788_v40  ;;  %v324_v40 = vshll.u32 %v323_v11, 16  ;;  %v3863_v11 = vld [vmem:[#allocation7_spill] sm:$0xff] }
 0x1d0   :  { %v366_v58 = vpop.xlane.xlu1 %365  ;;  %v607_v52 = vcvt.f32.s32 %v606_v34  ;;  %1924 = vrot.lane.b32.xlu1 %v1923_v7, %s2094_s10  ;;  %v352_v46 = vcvt.f32.s32 %v351_v10  ;;  %v90_v7 = vld [vmem:[%s3713_s1 + $0x98] sm:$0xff]  ;;  %v89_v34 = vld [vmem:[%s3713_s1 + $0x90] sm:$0xff] }
 0x1d1   :  { %v367_v15 = vcvt.f32.s32 %v366_v58  ;;  %1919 = vrot.lane.b32.xlu2 %v1918_v0, %s2094_s10  ;;  %v74_v10 = vld [vmem:[%s3713_s1 + $0x18] sm:$0xff] }
 0x1d2   :  { %v610_v57 = vadd.s32 %v609_v22, %v607_v52  ;;  %v355_v28 = vadd.s32 %v354_v50, %v352_v46  ;;  %v533_v52 = vcvt.f32.s32 %v2930_v6  ;;  %v519_v46 = vshll.u32 %v518_v9, 16 }
 0x1d3   :  { %v370_v59 = vadd.s32 %v369_v51, %v367_v15  ;;  %v1782_v15 = vsel %vm748_vm7, 1.0, %v3843_v54 }
 0x1d4   :  { %vm768_vm1 = vcmp.eq.s32.totalorder %v610_v57, %v93_v21  ;;  %vm751_vm3 = vcmp.eq.s32.totalorder %v355_v28, %v76_v32  ;;  %v71_v57 = vld [vmem:[%s3713_s1] sm:$0xff]  ;;  %v534_v50 = vshll.u32 %v533_v52, 16 }
 0x1d5   :  { %vm752_vm2 = vcmp.eq.s32.totalorder %v370_v59, %v77_v63  ;;  %v1802_v53 = vsel %vm768_vm1, 1.0, %v3843_v54  ;;  %v1785_v13 = vsel %vm751_vm3, 1.0, %v3843_v54  ;;  %vm746_vm11 = vcmp.eq.s32.totalorder %v2940_v20, %v71_v57 }
 0x1d6   :  { %v1786_v8 = vsel %vm752_vm2, 1.0, %v3843_v54 }
 0x1d7   :  { %v336_v29 = vpop.xlane.xlu2 %335  ;;  %v576_v43 = vpop.xlane.xlu0 %575  ;;  %v1928_v12 = vpack.i.bf16 %v1802_v53, %v1786_v8  ;;  %v87_v53 = vld [vmem:[%s3713_s1 + $0x80] sm:$0xff]  ;;  %v88_v8 = vld [vmem:[%s3713_s1 + $0x88] sm:$0xff] }
 0x1d8   :  { %v591_v35 = vpop.xlane.xlu1 %590  ;;  %v337_v39 = vcvt.f32.s32 %v336_v29  ;;  %v577_v45 = vcvt.f32.s32 %v576_v43  ;;  %v1780_v43 = vsel %vm746_vm11, 1.0, %v3843_v54 }
 0x1d9   :  { %v592_v48 = vcvt.f32.s32 %v591_v35  ;;  %1929 = vrot.lane.b32.xlu0 %v1928_v12, %s2094_s10  ;;  %v3857_v35 = vld [vmem:[#allocation22_spill] sm:$0xff] }
 0x1da   :  { %v340_v19 = vadd.s32 %v339_v31, %v337_v39  ;;  %v580_v60 = vadd.s32 %v579_v47, %v577_v45  ;;  %v1781_v47 = vsel %vm747_vm12, 1.0, %v3843_v54  ;;  %vm862_vm15 = vcmp.gt.f32.partialorder %v3857_v35, %v3123_v36  ;;  %v3130_v39 = vld [vmem:[%s3715_s3] ss:$0 sm:$0xff]  ;;  %v3858_v45 = vld [vmem:[#allocation8_spill] sm:$0xff]  ;;  %s2096_s3 = smov 126  }
 0x1db   :  { %v595_v2 = vadd.s32 %v594_v30, %v592_v48  ;;  %vm898_vm0 = vcmp.le.f32.partialorder %v3857_v35, %v3130_v39  ;;  %vm846_vm1 = vcmp.gt.f32.partialorder %v3858_v45, %v3123_v36  ;;  %vm882_vm2 = vcmp.le.f32.partialorder %v3858_v45, %v3130_v39 }
 0x1dc   :  { %vm750_vm4 = vcmp.eq.s32.totalorder %v340_v19, %v75_v33  ;;  %vm766_vm5 = vcmp.eq.s32.totalorder %v580_v60, %v91_v25  ;;  %vm930_vm3 = vmand %vm862_vm15, %vm898_vm0  ;;  %v3859_v33 = vld [vmem:[#allocation21_spill] sm:$0xff]  ;;  %v3861_v60 = vld [vmem:[#allocation27_spill] sm:$0xff] }
 0x1dd   :  { %vm767_vm6 = vcmp.eq.s32.totalorder %v595_v2, %v92_v1  ;;  %v1784_v49 = vsel %vm750_vm4, 1.0, %v3843_v54  ;;  %v1800_v42 = vsel %vm766_vm5, 1.0, %v3843_v54  ;;  %vm914_vm4 = vmand %vm846_vm1, %vm882_vm2  ;;  %v1828_v30 = vsel %vm930_vm3, 1.0, %v3843_v54  ;;  %v3860_v1 = vld [vmem:[#allocation11_spill] sm:$0xff] }
 0x1de   :  { %v1801_v16 = vsel %vm767_vm6, 1.0, %v3843_v54  ;;  %v1938_v5 = vpack.i.bf16 %v1800_v42, %v1784_v49  ;;  %v1812_v48 = vsel %vm914_vm4, 1.0, %v3843_v54  ;;  %vm863_vm5 = vcmp.gt.f32.partialorder %v3859_v33, %v3123_v36  ;;  %v3862_v2 = vld [vmem:[#allocation23_spill] sm:$0xff]  ;;  %v3864_v49 = vld [vmem:[#allocation28_spill] sm:$0xff] }
 0x1df   :  { %v561_v41 = vpop.xlane.xlu2 %560  ;;  %v546_v61 = vpop.xlane.xlu0 %545  ;;  %v1933_v27 = vpack.i.bf16 %v1801_v16, %v1785_v13  ;;  %vm899_vm6 = vcmp.le.f32.partialorder %v3859_v33, %v3130_v39  ;;  %v1963_v25 = vpack.i.bf16 %v1828_v30, %v1812_v48  ;;  %vm847_vm7 = vcmp.gt.f32.partialorder %v3860_v1, %v3123_v36 }
 0x1e0   :  { %v321_v23 = vpop.xlane.xlu1 %320  ;;  %v562_v18 = vcvt.f32.s32 %v561_v41  ;;  %v547_v17 = vcvt.f32.s32 %v546_v61  ;;  %1939 = vrot.lane.b32.xlu1 %v1938_v5, %s2094_s10  ;;  %vm864_vm11 = vcmp.gt.f32.partialorder %v3861_v60, %v3123_v36  ;;  %vm900_vm12 = vcmp.le.f32.partialorder %v3861_v60, %v3130_v39 }
 0x1e1   :  { %v322_v3 = vcvt.f32.s32 %v321_v23  ;;  %1934 = vrot.lane.b32.xlu2 %v1933_v27, %s2094_s10  ;;  %v961_v62 = vpack.c.bf16 %v3862_v2, %v3862_v2  ;;  %v977_v42 = vpack.c.bf16 %v3864_v49, %v3864_v49  ;;  %vm932_vm15 = vmand %vm864_vm11, %vm900_vm12  ;;  %v3865_v27 = vld [vmem:[#allocation10_spill] sm:$0xff]  ;;  %vm1170_vm3 = vcmask 7168  }
 0x1e2   :  { %v565_v0 = vadd.s32 %v564_v44, %v562_v18  ;;  %v550_v22 = vadd.s32 %v549_v56, %v547_v17  ;;  %v1830_v5 = vsel %vm932_vm15, 1.0, %v3843_v54  ;;  %vm849_vm1 = vcmp.gt.f32.partialorder %v3865_v27, %v3123_v36  ;;  %v3866_v56 = vld [vmem:[#allocation18_spill] sm:$0xff] }
 0x1e3   :  { %v325_v58 = vadd.s32 %v324_v40, %v322_v3  ;;  %v993_v16 = vunpack.c.l.bf16 %v961_v62  ;;  %v1009_v38 = vunpack.c.l.bf16 %v977_v42  ;;  %vm885_vm2 = vcmp.le.f32.partialorder %v3865_v27, %v3130_v39 }
 0x1e4   :  { %vm765_vm8 = vcmp.eq.s32.totalorder %v565_v0, %v90_v7  ;;  %vm764_vm9 = vcmp.eq.s32.totalorder %v550_v22, %v89_v34  ;;  %v960_v44 = vpack.c.bf16 %v3866_v56, %v3866_v56  ;;  %v3867_v7 = vld [vmem:[#allocation26_spill] sm:$0xff]  ;;  %v3868_v0 = vld [vmem:[#allocation33_spill] sm:$0xff] }
 0x1e5   :  { %vm749_vm10 = vcmp.eq.s32.totalorder %v325_v58, %v74_v10  ;;  %v1799_v51 = vsel %vm765_vm8, 1.0, %v3843_v54  ;;  %v1798_v14 = vsel %vm764_vm9, 1.0, %v3843_v54  ;;  %vm883_vm8 = vcmp.le.f32.partialorder %v3860_v1, %v3130_v39  ;;  %vm931_vm9 = vmand %vm863_vm5, %vm899_vm6 }
 0x1e6   :  { %v1783_v21 = vsel %vm749_vm10, 1.0, %v3843_v54  ;;  %v1948_v63 = vpack.i.bf16 %v1798_v14, %v1782_v15  ;;  %vm915_vm10 = vmand %vm847_vm7, %vm883_vm8  ;;  %v1829_v19 = vsel %vm931_vm9, 1.0, %v3843_v54  ;;  %v1025_v40 = vsub.f32 %v3862_v2, %v993_v16  ;;  %v3870_v14 = vld [vmem:[#allocation32_spill] sm:$0xff]  ;;  %v3877_v2 = vld [vmem:[#allocation15_spill] sm:$0xff] }
 0x1e7   :  { %v516_v59 = vpop.xlane.xlu2 %515  ;;  %v1943_v6 = vpack.i.bf16 %v1799_v51, %v1783_v21  ;;  %v1813_v55 = vsel %vm915_vm10, 1.0, %v3843_v54  ;;  %v1041_v3 = vsub.f32 %v3864_v49, %v1009_v38  ;;  %vm865_vm4 = vcmp.gt.f32.partialorder %v3867_v7, %v3123_v36  ;;  %vm917_vm7 = vmand %vm849_vm1, %vm885_vm2  ;;  %v3869_v51 = vld [vmem:[#allocation19_spill] sm:$0xff] }
 0x1e8   :  { %v531_v4 = vpop.xlane.xlu1 %530  ;;  %v517_v26 = vcvt.f32.s32 %v516_v59  ;;  %v1965_v13 = vpack.i.bf16 %v1829_v19, %v1813_v55  ;;  %vm901_vm5 = vcmp.le.f32.partialorder %v3867_v7, %v3130_v39  ;;  %vm1203_vm6 = vcmask 15360   ;;  %v3871_v59 = vld [vmem:[#allocation6_spill] sm:$0xff] }
 0x1e9   :  { %v532_v24 = vcvt.f32.s32 %v531_v4  ;;  %1944 = vrot.lane.b32.xlu0 %v1943_v6, %s2094_s10  ;;  %1949 = vrot.lane.b32.xlu2 %v1948_v63, %s2094_s10  ;;  %v976_v22 = vpack.c.bf16 %v3868_v0, %v3868_v0  ;;  %vm933_vm8 = vmand %vm865_vm4, %vm901_vm5  ;;  %v959_v15 = vpack.c.bf16 %v3869_v51, %v3869_v51  ;;  %v975_v21 = vpack.c.bf16 %v3870_v14, %v3870_v14 }
 0x1ea   :  { %v520_v28 = vadd.s32 %v519_v46, %v517_v26  ;;  %v992_v63 = vunpack.c.l.bf16 %v960_v44  ;;  %vm850_vm9 = vcmp.gt.f32.partialorder %v3871_v59, %v3123_v36  ;;  %v1815_v46 = vsel %vm917_vm7, 1.0, %v3843_v54 }
 0x1eb   :  { %v535_v29 = vadd.s32 %v534_v50, %v532_v24  ;;  %v1008_v57 = vunpack.c.l.bf16 %v976_v22  ;;  %v1831_v37 = vsel %vm933_vm8, 1.0, %v3843_v54  ;;  %vm886_vm10 = vcmp.le.f32.partialorder %v3871_v59, %v3130_v39  ;;  %v3872_v24 = vld [vmem:[#allocation25_spill] sm:$0xff]  ;;  %v3882_v22 = vld [vmem:[#allocation16_spill] sm:$0xff] }
 0x1ec   :  { %vm762_vm13 = vcmp.eq.s32.totalorder %v520_v28, %v87_v53  ;;  %v991_v50 = vunpack.c.l.bf16 %v959_v15  ;;  %vm866_vm11 = vcmp.gt.f32.partialorder %v3872_v24, %v3123_v36  ;;  %v3873_v53 = vld [vmem:[#allocation20_spill] sm:$0xff]  ;;  %vm902_vm12 = vcmp.le.f32.partialorder %v3872_v24, %v3130_v39 }
 0x1ed   :  { %vm763_vm14 = vcmp.eq.s32.totalorder %v535_v29, %v88_v8  ;;  %v1796_v12 = vsel %vm762_vm13, 1.0, %v3843_v54  ;;  %vm848_vm13 = vcmp.gt.f32.partialorder %v3863_v11, %v3123_v36  ;;  %v958_v8 = vpack.c.bf16 %v3873_v53, %v3873_v53 }
 0x1ee   :  { %v1797_v31 = vsel %vm763_vm14, 1.0, %v3843_v54  ;;  %v1958_v32 = vpack.i.bf16 %v1796_v12, %v1780_v43  ;;  %vm884_vm14 = vcmp.le.f32.partialorder %v3863_v11, %v3130_v39  ;;  %v1007_v43 = vunpack.c.l.bf16 %v975_v21  ;;  %v3883_v21 = vld [vmem:[#allocation30_spill] sm:$0xff] }
 0x1ef   :  { %v1953_v20 = vpack.i.bf16 %v1797_v31, %v1781_v47  ;;  %vm916_vm0 = vmand %vm848_vm13, %vm884_vm14  ;;  %v1969_v12 = vpack.i.bf16 %v1831_v37, %v1815_v46  ;;  %v1024_v47 = vsub.f32 %v3866_v56, %v992_v63  ;;  %v1040_v31 = vsub.f32 %v3868_v0, %v1008_v57  ;;  %v3884_v46 = vld [vmem:[#allocation38_spill] sm:$0xff] }
 0x1f0   :  { %v1814_v61 = vsel %vm916_vm0, 1.0, %v3843_v54  ;;  %vm3209_vm13 = vmand %vm850_vm9, %vm886_vm10  ;;  %v957_v62 = vpack.c.bf16 %v3877_v2, %v3877_v2  ;;  %vm867_vm1 = vcmp.gt.f32.partialorder %v3883_v21, %v3123_v36  ;;  %vm903_vm2 = vcmp.le.f32.partialorder %v3883_v21, %v3130_v39 }
 0x1f1   :  { %1954 = vrot.lane.b32.xlu1 %v1953_v20, %s2094_s10  ;;  %1959 = vrot.lane.b32.xlu0 %v1958_v32, %s2094_s10  ;;  %v1967_v17 = vpack.i.bf16 %v1830_v5, %v1814_v61  ;;  %v3876_v20 = vld [vmem:[#allocation31_spill] sm:$0xff]  ;;  %vm3230_vm14 = vmand %vm866_vm11, %vm902_vm12  ;;  %v972_v37 = vpack.c.bf16 %v3884_v46, %v3884_v46 }
 0x1f2   :  { %v974_v30 = vpack.c.bf16 %v3876_v20, %v3876_v20  ;;  %v3880_v61 = vld [vmem:[#allocation39_spill] sm:$0xff]  ;;  %v989_v15 = vunpack.c.l.bf16 %v957_v62  ;;  %vm935_vm5 = vmand %vm867_vm1, %vm903_vm2 }
 0x1f3   :  { %v973_v44 = vpack.c.bf16 %v3880_v61, %v3880_v61 }
 0x20a   :  { %v1895_v9 = vpop.permute.xlu2 %1894 }
 0x20b   :  { %v1896_v6 = vunpack.i.l.bf16 %v1895_v9  ;;  %v1897_v4 = vunpack.i.h.bf16 %v1895_v9 }
 0x20d   :  { %v1184_v19 = vsel %vm1170_vm3, %v991_v50, %v1896_v6  ;;  %v1005_v6 = vunpack.c.l.bf16 %v973_v44 }
 0x20f   :  { %1964 = vxpose.xlu2.b32.start [1/16] %v1963_v25, 128 }
 0x217   :  { %1966 = vxpose.xlu2.b32.cont [2/16] %v1965_v13, 128  ;;  %v1023_v13 = vsub.f32 %v3869_v51, %v991_v50 }
 0x21a   :  { %v1885_v41 = vpop.permute.xlu0 %1884 }
 0x21b   :  { %v1887_v23 = vunpack.i.h.bf16 %v1885_v41  ;;  %v1886_v18 = vunpack.i.l.bf16 %v1885_v41  ;;  %v1905_v55 = vpop.permute.xlu2 %1904  ;;  %v1816_v41 = vsel %vm3209_vm13, 1.0, %v3843_v54 }
 0x21d   :  { %v1186_v34 = vsel %vm1170_vm3, %v993_v16, %v1886_v18  ;;  %v1202_v10 = vsel %vm1170_vm3, %v1009_v38, %v1887_v23  ;;  %v1200_v16 = vsel %vm1170_vm3, %v1007_v43, %v1897_v4  ;;  %v1039_v38 = vsub.f32 %v3870_v14, %v1007_v43  ;;  %v3881_v23 = vld [vmem:[#allocation9_spill] sm:$0xff] }
 0x21e   :  { %v1219_v58 = vsel %vm1203_vm6, %v1186_v34, %v1025_v40  ;;  %v1235_v52 = vsel %vm1203_vm6, %v1202_v10, %v1041_v3  ;;  %vm851_vm15 = vcmp.gt.f32.partialorder %v3881_v23, %v3123_v36  ;;  %v1217_v18 = vsel %vm1203_vm6, %v1184_v19, %v1023_v13  ;;  %v3887_v13 = vld [vmem:[#allocation14_spill] sm:$0xff] }
 0x21f   :  { %1968 = vxpose.xlu2.b32.cont [3/16] %v1967_v17, 128  ;;  %1380 = vmatpush.msra.mxu0 %v1219_v58  ;;  %v990_v17 = vunpack.c.l.bf16 %v958_v8  ;;  %v1006_v40 = vunpack.c.l.bf16 %v974_v30  ;;  %vm887_vm0 = vcmp.le.f32.partialorder %v3881_v23, %v3130_v39  ;;  %v1906_v3 = vunpack.i.l.bf16 %v1905_v55 }
 0x220   :  { %1844 = vmatpush.msra.mxu2 %v1219_v58  ;;  %1445 = vmatpush.msra.mxu1 %v1235_v52  ;;  %v1233_v34 = vsel %vm1203_vm6, %v1200_v16, %v1039_v38  ;;  %v1832_v10 = vsel %vm3230_vm14, 1.0, %v3843_v54  ;;  %v956_v58 = vpack.c.bf16 %v3882_v22, %v3882_v22  ;;  %vm3268_vm4 = vmand %vm851_vm15, %vm887_vm0  ;;  %v1037_v30 = vsub.f32 %v3880_v61, %v1005_v6  ;;  %v3888_v38 = vld [vmem:[#allocation17_spill] sm:$0xff] }
 0x221   :  { %1860 = vmatpush.msra.mxu3 %v1235_v52  ;;  %v1907_v52 = vunpack.i.h.bf16 %v1905_v55  ;;  %v1971_v4 = vpack.i.bf16 %v1832_v10, %v1816_v41  ;;  %v1038_v50 = vsub.f32 %v3876_v20, %v1006_v40  ;;  %vm852_vm7 = vcmp.gt.f32.partialorder %v3887_v13, %v3123_v36  ;;  %v3890_v10 = vld [vmem:[#allocation40_spill] sm:$0xff] }
 0x222   :  { %vm888_vm8 = vcmp.le.f32.partialorder %v3887_v13, %v3130_v39  ;;  %v955_v41 = vpack.c.bf16 %v3888_v38, %v3888_v38 }
 0x223   :  { %v1890_v26 = vpop.permute.xlu1 %1889  ;;  %v1198_v32 = vsel %vm1170_vm3, %v1005_v6, %v1907_v52  ;;  %vm920_vm11 = vmand %vm852_vm7, %vm888_vm8  ;;  %v3892_v6 = vld [vmem:[#allocation43_spill] sm:$0xff]  ;;  %vm891_vm7 = vcmp.le.f32.partialorder %v3888_v38, %v3130_v39  ;;  %vm907_vm8 = vcmp.le.f32.partialorder %v3890_v10, %v3130_v39 }
 0x224   :  { %v1892_v28 = vunpack.i.h.bf16 %v1890_v26  ;;  %v1891_v29 = vunpack.i.l.bf16 %v1890_v26  ;;  %v1022_v26 = vsub.f32 %v3873_v53, %v990_v17  ;;  %v1231_v62 = vsel %vm1203_vm6, %v1198_v32, %v1037_v30 }
 0x226   :  { %v1185_v48 = vsel %vm1170_vm3, %v992_v63, %v1891_v29  ;;  %v1201_v25 = vsel %vm1170_vm3, %v1008_v57, %v1892_v28  ;;  %v1182_v29 = vsel %vm1170_vm3, %v989_v15, %v1906_v3 }
 0x227   :  { %1970 = vxpose.xlu2.b32.cont [4/16] %v1969_v12, 128  ;;  %v1218_v49 = vsel %vm1203_vm6, %v1185_v48, %v1024_v47  ;;  %v1234_v42 = vsel %vm1203_vm6, %v1201_v25, %v1040_v31  ;;  %v1021_v31 = vsub.f32 %v3877_v2, %v989_v15  ;;  %v988_v48 = vunpack.c.l.bf16 %v956_v58  ;;  %v3891_v15 = vld [vmem:[#allocation12_spill] sm:$0xff] }
 0x228   :  { %1381 = vmatpush.msra.mxu0 %v1218_v49  ;;  %1845 = vmatpush.msra.mxu2 %v1218_v49  ;;  %v1004_v25 = vunpack.c.l.bf16 %v972_v37  ;;  %v1817_v49 = vsel %vm3268_vm4, 1.0, %v3843_v54  ;;  %v971_v58 = vpack.c.bf16 %v3890_v10, %v3890_v10  ;;  %v970_v37 = vpack.c.bf16 %v3892_v6, %v3892_v6 }
 0x229   :  { %1446 = vmatpush.msra.mxu1 %v1234_v42  ;;  %1861 = vmatpush.msra.mxu3 %v1234_v42  ;;  %v1215_v19 = vsel %vm1203_vm6, %v1182_v29, %v1021_v31  ;;  %v1833_v42 = vsel %vm935_vm5, 1.0, %v3843_v54  ;;  %v1020_v44 = vsub.f32 %v3882_v22, %v988_v48  ;;  %v3894_v31 = vld [vmem:[#allocation13_spill] sm:$0xff]  ;;  %vm855_vm4 = vcmp.gt.f32.partialorder %v3888_v38, %v3123_v36 }
 0x22a   :  { %1382 = vmatpush.msra.mxu0 %v1217_v18  ;;  %1846 = vmatpush.msra.mxu2 %v1217_v18  ;;  %v1036_v18 = vsub.f32 %v3884_v46, %v1004_v25  ;;  %v953_v32 = vpack.c.bf16 %v3894_v31, %v3894_v31  ;;  %vm853_vm15 = vcmp.gt.f32.partialorder %v3894_v31, %v3123_v36 }
 0x22b   :  { %1447 = vmatpush.msra.mxu1 %v1233_v34  ;;  %1862 = vmatpush.msra.mxu3 %v1233_v34  ;;  %v1900_v9 = vpop.permute.xlu0 %1899  ;;  %vm889_vm0 = vcmp.le.f32.partialorder %v3894_v31, %v3130_v39  ;;  %vm871_vm5 = vcmp.gt.f32.partialorder %v3890_v10, %v3123_v36 }
 0x22c   :  { %v1902_v63 = vunpack.i.h.bf16 %v1900_v9  ;;  %v1901_v57 = vunpack.i.l.bf16 %v1900_v9  ;;  %vm921_vm2 = vmand %vm853_vm15, %vm889_vm0 }
 0x22e   :  { %v1183_v8 = vsel %vm1170_vm3, %v990_v17, %v1901_v57  ;;  %v1199_v28 = vsel %vm1170_vm3, %v1006_v40, %v1902_v63  ;;  %v3889_v17 = vld [vmem:[#allocation29_spill] sm:$0xff]  ;;  %v1973_v40 = vpack.i.bf16 %v1833_v42, %v1817_v49  ;;  %v954_v63 = vpack.c.bf16 %v3891_v15, %v3891_v15  ;;  %v1920_v57 = vpop.permute.xlu2 %1919 }
 0x22f   :  { %1972 = vxpose.xlu2.b32.cont [5/16] %v1971_v4, 128  ;;  %v1216_v12 = vsel %vm1203_vm6, %v1183_v8, %v1022_v26  ;;  %v1232_v47 = vsel %vm1203_vm6, %v1199_v28, %v1038_v50  ;;  %vm868_vm9 = vcmp.gt.f32.partialorder %v3889_v17, %v3123_v36  ;;  %vm904_vm10 = vcmp.le.f32.partialorder %v3889_v17, %v3130_v39 }
 0x230   :  { %1383 = vmatpush.msra.mxu0 %v1216_v12  ;;  %1847 = vmatpush.msra.mxu2 %v1216_v12  ;;  %vm936_vm12 = vmand %vm868_vm9, %vm904_vm10  ;;  %v987_v4 = vunpack.c.l.bf16 %v955_v41  ;;  %v1003_v26 = vunpack.c.l.bf16 %v971_v58  ;;  %v1921_v50 = vunpack.i.l.bf16 %v1920_v57  ;;  %v1818_v8 = vsel %vm920_vm11, 1.0, %v3843_v54 }
 0x231   :  { %1448 = vmatpush.msra.mxu1 %v1232_v47  ;;  %1863 = vmatpush.msra.mxu3 %v1232_v47  ;;  %v1834_v28 = vsel %vm936_vm12, 1.0, %v3843_v54  ;;  %v986_v29 = vunpack.c.l.bf16 %v954_v63  ;;  %v1922_v43 = vunpack.i.h.bf16 %v1920_v57  ;;  %v3893_v47 = vld [vmem:[#allocation46_spill] sm:$0xff]  ;;  %vm3388_vm9 = vmand %vm855_vm4, %vm891_vm7  ;;  %vm856_vm11 = vcmp.gt.f32.partialorder %v3882_v22, %v3123_v36 }
 0x232   :  { %1384 = vmatpush.msra.mxu0 %v1215_v19  ;;  %1848 = vmatpush.msra.mxu2 %v1215_v19  ;;  %v1910_v55 = vpop.permute.xlu1 %1909  ;;  %vm869_vm13 = vcmp.gt.f32.partialorder %v3893_v47, %v3123_v36  ;;  %vm905_vm14 = vcmp.le.f32.partialorder %v3893_v47, %v3130_v39  ;;  %v969_v19 = vpack.c.bf16 %v3893_v47, %v3893_v47  ;;  %vm939_vm10 = vmand %vm871_vm5, %vm907_vm8 }
 0x233   :  { %1449 = vmatpush.msra.mxu1 %v1231_v62  ;;  %1864 = vmatpush.msra.mxu3 %v1231_v62  ;;  %v1912_v16 = vunpack.i.h.bf16 %v1910_v55  ;;  %v1911_v5 = vunpack.i.l.bf16 %v1910_v55  ;;  %v1975_v62 = vpack.i.bf16 %v1834_v28, %v1818_v8  ;;  %v1019_v55 = vsub.f32 %v3888_v38, %v987_v4  ;;  %vm937_vm1 = vmand %vm869_vm13, %vm905_vm14 }
 0x234   :  { %v1035_v49 = vsub.f32 %v3890_v10, %v1003_v26  ;;  %v1001_v58 = vunpack.c.l.bf16 %v969_v19  ;;  %v1835_v63 = vsel %vm937_vm1, 1.0, %v3843_v54  ;;  %v1821_v10 = vsel %vm3388_vm9, 1.0, %v3843_v54 }
 0x235   :  { %v1181_v3 = vsel %vm1170_vm3, %v988_v48, %v1911_v5  ;;  %v1197_v34 = vsel %vm1170_vm3, %v1004_v25, %v1912_v16  ;;  %v1002_v25 = vunpack.c.l.bf16 %v970_v37  ;;  %v1179_v5 = vsel %vm1170_vm3, %v986_v29, %v1921_v50 }
 0x236   :  { %v1214_v52 = vsel %vm1203_vm6, %v1181_v3, %v1020_v44  ;;  %v1230_v9 = vsel %vm1203_vm6, %v1197_v34, %v1036_v18  ;;  %v1018_v18 = vsub.f32 %v3891_v15, %v986_v29  ;;  %v985_v34 = vunpack.c.l.bf16 %v953_v32 }
 0x237   :  { %1974 = vxpose.xlu2.b32.cont [6/16] %v1973_v40, 128  ;;  %1385 = vmatpush.msra.mxu0 %v1214_v52  ;;  %v1195_v40 = vsel %vm1170_vm3, %v1002_v25, %v1922_v43  ;;  %v1034_v3 = vsub.f32 %v3892_v6, %v1002_v25  ;;  %v1819_v37 = vsel %vm921_vm2, 1.0, %v3843_v54  ;;  %v952_v50 = vpack.c.bf16 %v3887_v13, %v3887_v13 }
 0x238   :  { %1849 = vmatpush.msra.mxu2 %v1214_v52  ;;  %1450 = vmatpush.msra.mxu1 %v1230_v9  ;;  %v1212_v52 = vsel %vm1203_vm6, %v1179_v5, %v1018_v18  ;;  %v1977_v8 = vpack.i.bf16 %v1835_v63, %v1819_v37  ;;  %v968_v43 = vpack.c.bf16 %v3889_v17, %v3889_v17 }
 0x239   :  { %1865 = vmatpush.msra.mxu3 %v1230_v9  ;;  %v1228_v9 = vsel %vm1203_vm6, %v1195_v40, %v1034_v3  ;;  %vm892_vm12 = vcmp.le.f32.partialorder %v3882_v22, %v3130_v39  ;;  %vm872_vm13 = vcmp.gt.f32.partialorder %v3884_v46, %v3123_v36  ;;  %vm908_vm14 = vcmp.le.f32.partialorder %v3884_v46, %v3130_v39 }
 0x23a   :  { %v1000_v25 = vunpack.c.l.bf16 %v968_v43  ;;  %v965_v43 = vpack.c.bf16 %v3867_v7, %v3867_v7  ;;  %vm924_vm15 = vmand %vm856_vm11, %vm892_vm12  ;;  %v947_v22 = vpack.c.bf16 %v3860_v1, %v3860_v1  ;;  %vm873_vm1 = vcmp.gt.f32.partialorder %v3880_v61, %v3123_v36 }
 0x23b   :  { %v1915_v12 = vpop.permute.xlu0 %1914  ;;  %vm940_vm0 = vmand %vm872_vm13, %vm908_vm14  ;;  %vm909_vm2 = vcmp.le.f32.partialorder %v3880_v61, %v3130_v39  ;;  %vm857_vm4 = vcmp.gt.f32.partialorder %v3877_v2, %v3123_v36  ;;  %vm893_vm5 = vcmp.le.f32.partialorder %v3877_v2, %v3130_v39  ;;  %vm874_vm9 = vcmp.gt.f32.partialorder %v3876_v20, %v3123_v36 }
 0x23c   :  { %v1917_v30 = vunpack.i.h.bf16 %v1915_v12  ;;  %v1916_v48 = vunpack.i.l.bf16 %v1915_v12  ;;  %v1032_v40 = vsub.f32 %v3889_v17, %v1000_v25  ;;  %vm941_vm7 = vmand %vm873_vm1, %vm909_vm2  ;;  %vm858_vm11 = vcmp.gt.f32.partialorder %v3873_v53, %v3123_v36 }
 0x23d   :  { %vm925_vm8 = vmand %vm857_vm4, %vm893_vm5  ;;  %vm894_vm12 = vcmp.le.f32.partialorder %v3873_v53, %v3130_v39  ;;  %vm859_vm1 = vcmp.gt.f32.partialorder %v3869_v51, %v3123_v36  ;;  %vm895_vm2 = vcmp.le.f32.partialorder %v3869_v51, %v3130_v39  ;;  %vm876_vm5 = vcmp.gt.f32.partialorder %v3868_v0, %v3123_v36 }
 0x23e   :  { %v1180_v42 = vsel %vm1170_vm3, %v987_v4, %v1916_v48  ;;  %v1196_v16 = vsel %vm1170_vm3, %v1003_v26, %v1917_v30  ;;  %v1017_v4 = vsub.f32 %v3894_v31, %v985_v34  ;;  %v1033_v26 = vsub.f32 %v3893_v47, %v1001_v58  ;;  %v1935_v30 = vpop.permute.xlu2 %1934  ;;  %vm926_vm14 = vmand %vm858_vm11, %vm894_vm12 }
 0x23f   :  { %1976 = vxpose.xlu2.b32.cont [7/16] %v1975_v62, 128  ;;  %v1213_v41 = vsel %vm1203_vm6, %v1180_v42, %v1019_v55  ;;  %v1229_v44 = vsel %vm1203_vm6, %v1196_v16, %v1035_v49  ;;  %v951_v31 = vpack.c.bf16 %v3881_v23, %v3881_v23  ;;  %v967_v47 = vpack.c.bf16 %v3883_v21, %v3883_v21  ;;  %vm927_vm4 = vmand %vm859_vm1, %vm895_vm2 }
 0x240   :  { %1386 = vmatpush.msra.mxu0 %v1213_v41  ;;  %1850 = vmatpush.msra.mxu2 %v1213_v41  ;;  %v984_v48 = vunpack.c.l.bf16 %v952_v50  ;;  %v1936_v19 = vunpack.i.l.bf16 %v1935_v30  ;;  %v1937_v49 = vunpack.i.h.bf16 %v1935_v30  ;;  %v950_v16 = vpack.c.bf16 %v3871_v59, %v3871_v59 }
 0x241   :  { %1451 = vmatpush.msra.mxu1 %v1229_v44  ;;  %1866 = vmatpush.msra.mxu3 %v1229_v44  ;;  %v983_v62 = vunpack.c.l.bf16 %v951_v31  ;;  %v999_v55 = vunpack.c.l.bf16 %v967_v47  ;;  %v966_v44 = vpack.c.bf16 %v3872_v24, %v3872_v24  ;;  %v1823_v2 = vsel %vm925_vm8, 1.0, %v3843_v54 }
 0x242   :  { %1387 = vmatpush.msra.mxu0 %v1212_v52  ;;  %1851 = vmatpush.msra.mxu2 %v1212_v52  ;;  %v1925_v15 = vpop.permute.xlu1 %1924  ;;  %v1016_v18 = vsub.f32 %v3887_v13, %v984_v48  ;;  %v982_v37 = vunpack.c.l.bf16 %v950_v16  ;;  %vm860_vm8 = vcmp.gt.f32.partialorder %v3866_v56, %v3123_v36  ;;  %vm22_vm12 = vcmask 23552  }
 0x243   :  { %1452 = vmatpush.msra.mxu1 %v1228_v9  ;;  %1867 = vmatpush.msra.mxu3 %v1228_v9  ;;  %v1927_v57 = vunpack.i.h.bf16 %v1925_v15  ;;  %v1926_v6 = vunpack.i.l.bf16 %v1925_v15  ;;  %v3897_v9 = vld [vmem:[#allocation49_spill] sm:$0xff]  ;;  %v3898_v15 = vld [vmem:[#allocation48_spill] sm:$0xff]  ;;  %v1031_v38 = vsub.f32 %v3883_v21, %v999_v55  ;;  %v1837_v21 = vsel %vm939_vm10, 1.0, %v3843_v54  ;;  %23 = vst.msk [vmem:[#allocation2] sm:$0xff] %vm22_vm12, %v3843_v54 }
 0x244   :  { %v3899_v63 = vpack.i.bf16 %v3897_v9, %v3898_v15  ;;  %v1981_v31 = vpack.i.bf16 %v1837_v21, %v1821_v10  ;;  %vm910_vm10 = vcmp.le.f32.partialorder %v3876_v20, %v3130_v39  ;;  %v1824_v20 = vsel %vm926_vm14, 1.0, %v3843_v54  ;;  %24 = vst.msk [vmem:[#allocation2 + $0x8] sm:$0xff] %vm22_vm12, %v3843_v54 }
 0x245   :  { %v1178_v28 = vsel %vm1170_vm3, %v985_v34, %v1926_v6  ;;  %v1194_v29 = vsel %vm1170_vm3, %v1001_v58, %v1927_v57  ;;  %v1176_v58 = vsel %vm1170_vm3, %v983_v62, %v1936_v19  ;;  %v1015_v57 = vsub.f32 %v3881_v23, %v983_v62  ;;  %vm942_vm13 = vmand %vm874_vm9, %vm910_vm10  ;;  %25 = vst.msk [vmem:[#allocation2 + $0x10] sm:$0xff] %vm22_vm12, %v3843_v54 }
 0x246   :  { %v1211_v12 = vsel %vm1203_vm6, %v1178_v28, %v1017_v4  ;;  %v1227_v32 = vsel %vm1203_vm6, %v1194_v29, %v1033_v26  ;;  %v1192_v6 = vsel %vm1170_vm3, %v999_v55, %v1937_v49  ;;  %v998_v4 = vunpack.c.l.bf16 %v966_v44  ;;  %26 = vst.msk [vmem:[#allocation2 + $0x18] sm:$0xff] %vm22_vm12, %v3843_v54 }
 0x247   :  { %1978 = vxpose.xlu2.b32.cont [8/16] %v1977_v8, 128  ;;  %1388 = vmatpush.msra.mxu0 %v1211_v12  ;;  %v1209_v26 = vsel %vm1203_vm6, %v1176_v58, %v1015_v57  ;;  %v1225_v23 = vsel %vm1203_vm6, %v1192_v6, %v1031_v38  ;;  %v949_v29 = vpack.c.bf16 %v3865_v27, %v3865_v27  ;;  %v997_v19 = vunpack.c.l.bf16 %v965_v43 }
 0x248   :  { %1852 = vmatpush.msra.mxu2 %v1211_v12  ;;  %1453 = vmatpush.msra.mxu1 %v1227_v32  ;;  %v1014_v12 = vsub.f32 %v3871_v59, %v982_v37  ;;  %v948_v59 = vpack.c.bf16 %v3863_v11, %v3863_v11  ;;  %v964_v62 = vpack.c.bf16 %v3861_v60, %v3861_v60  ;;  %v1822_v55 = vsel %vm924_vm15, 1.0, %v3843_v54 }
 0x249   :  { %1868 = vmatpush.msra.mxu3 %v1227_v32  ;;  %v1030_v32 = vsub.f32 %v3872_v24, %v998_v4  ;;  %v1950_v24 = vpop.permute.xlu2 %1949  ;;  %v981_v46 = vunpack.c.l.bf16 %v949_v29  ;;  %v962_v57 = vpack.c.bf16 %v3857_v35, %v3857_v35  ;;  %v979_v38 = vunpack.c.l.bf16 %v947_v22  ;;  %v3900_v22 = vld [vmem:[#allocation52_spill] sm:$0xff]  ;;  %27 = vst.msk [vmem:[#allocation2 + $0x20] sm:$0xff] %vm22_vm12, %v3843_v54 }
 0x24a   :  { %v1951_v49 = vunpack.i.l.bf16 %v1950_v24  ;;  %v980_v16 = vunpack.c.l.bf16 %v948_v59  ;;  %vm875_vm15 = vcmp.gt.f32.partialorder %v3870_v14, %v3123_v36  ;;  %vm896_vm9 = vcmp.le.f32.partialorder %v3866_v56, %v3130_v39  ;;  %28 = vst.msk [vmem:[#allocation2 + $0x28] sm:$0xff] %vm22_vm12, %v3843_v54 }
 0x24b   :  { %v1930_v42 = vpop.permute.xlu0 %1929  ;;  %v994_v10 = vunpack.c.l.bf16 %v962_v57  ;;  %vm928_vm11 = vmand %vm860_vm8, %vm896_vm9  ;;  %29 = vst.msk [vmem:[#allocation2 + $0x30] sm:$0xff] %vm22_vm12, %v3843_v54 }
 0x24c   :  { %v1932_v5 = vunpack.i.h.bf16 %v1930_v42  ;;  %v1931_v41 = vunpack.i.l.bf16 %v1930_v42  ;;  %v1838_v42 = vsel %vm940_vm0, 1.0, %v3843_v54  ;;  %v1012_v15 = vsub.f32 %v3863_v11, %v980_v16  ;;  %30 = vst.msk [vmem:[#allocation2 + $0x38] sm:$0xff] %vm22_vm12, %v3843_v54 }
 0x24d   :  { %v1983_v52 = vpack.i.bf16 %v1838_v42, %v1822_v55  ;;  %v1026_v59 = vsub.f32 %v3857_v35, %v994_v10  ;;  %vm911_vm0 = vcmp.le.f32.partialorder %v3870_v14, %v3130_v39  ;;  %31 = vst.msk [vmem:[#allocation2 + $0x40] sm:$0xff] %vm22_vm12, %v3843_v54 }
 0x24e   :  { %v1177_v3 = vsel %vm1170_vm3, %v984_v48, %v1931_v41  ;;  %v1193_v34 = vsel %vm1170_vm3, %v1000_v25, %v1932_v5  ;;  %v946_v5 = vpack.c.bf16 %v3858_v45, %v3858_v45  ;;  %v1952_v41 = vunpack.i.h.bf16 %v1950_v24  ;;  %32 = vst.msk [vmem:[#allocation2 + $0x48] sm:$0xff] %vm22_vm12, %v3843_v54 }
 0x24f   :  { %1980 = vxpose.xlu2.b32.cont [9/16] %v3899_v63, 128  ;;  %v1210_v13 = vsel %vm1203_vm6, %v1177_v3, %v1016_v18  ;;  %v1226_v17 = vsel %vm1203_vm6, %v1193_v34, %v1032_v40  ;;  %v1013_v18 = vsub.f32 %v3865_v27, %v981_v46  ;;  %v1029_v40 = vsub.f32 %v3867_v7, %v997_v19 }
 0x250   :  { %1389 = vmatpush.msra.mxu0 %v1210_v13  ;;  %1853 = vmatpush.msra.mxu2 %v1210_v13  ;;  %v996_v3 = vunpack.c.l.bf16 %v964_v62  ;;  %v963_v27 = vpack.c.bf16 %v3859_v33, %v3859_v33  ;;  %v1173_v63 = vsel %vm1170_vm3, %v980_v16, %v1951_v49  ;;  %v1826_v62 = vsel %vm928_vm11, 1.0, %v3843_v54  ;;  %v3901_v49 = vld [vmem:[#allocation51_spill] sm:$0xff]  ;;  %33 = vst.msk [vmem:[#allocation2 + $0x50] sm:$0xff] %vm22_vm12, %v3843_v54 }
 0x251   :  { %1454 = vmatpush.msra.mxu1 %v1226_v17  ;;  %1869 = vmatpush.msra.mxu3 %v1226_v17  ;;  %v1206_v11 = vsel %vm1203_vm6, %v1173_v63, %v1012_v15  ;;  %v3902_v42 = vpack.i.bf16 %v3900_v22, %v3901_v49  ;;  %34 = vst.msk [vmem:[#allocation2 + $0x58] sm:$0xff] %vm22_vm12, %v3843_v54 }
 0x252   :  { %1390 = vmatpush.msra.mxu0 %v1209_v26  ;;  %1854 = vmatpush.msra.mxu2 %v1209_v26  ;;  %v1940_v50 = vpop.permute.xlu1 %1939  ;;  %v1189_v17 = vsel %vm1170_vm3, %v996_v3, %v1952_v41  ;;  %v1028_v6 = vsub.f32 %v3861_v60, %v996_v3  ;;  %v1839_v26 = vsel %vm941_vm7, 1.0, %v3843_v54  ;;  %v978_v60 = vunpack.c.l.bf16 %v946_v5  ;;  %35 = vst.msk [vmem:[#allocation2 + $0x60] sm:$0xff] %vm22_vm12, %v3843_v54 }
 0x253   :  { %1455 = vmatpush.msra.mxu1 %v1225_v23  ;;  %1870 = vmatpush.msra.mxu3 %v1225_v23  ;;  %v1942_v8 = vunpack.i.h.bf16 %v1940_v50  ;;  %v1941_v28 = vunpack.i.l.bf16 %v1940_v50  ;;  %v1985_v43 = vpack.i.bf16 %v1839_v26, %v1823_v2  ;;  %vm912_vm7 = vcmp.le.f32.partialorder %v3868_v0, %v3130_v39  ;;  %36 = vst.msk [vmem:[#allocation2 + $0x68] sm:$0xff] %vm22_vm12, %v3843_v54 }
 0x254   :  { %vm944_vm10 = vmand %vm876_vm5, %vm912_vm7  ;;  %37 = vst.msk [vmem:[#allocation2 + $0x70] sm:$0xff] %vm22_vm12, %v3843_v54 }
 0x255   :  { %v1175_v47 = vsel %vm1170_vm3, %v982_v37, %v1941_v28  ;;  %v1191_v30 = vsel %vm1170_vm3, %v998_v4, %v1942_v8  ;;  %v995_v37 = vunpack.c.l.bf16 %v963_v27  ;;  %v1222_v4 = vsel %vm1203_vm6, %v1189_v17, %v1028_v6  ;;  %38 = vst.msk [vmem:[#allocation2 + $0x78] sm:$0xff] %vm22_vm12, %v3843_v54 }
 0x256   :  { %v1208_v48 = vsel %vm1203_vm6, %v1175_v47, %v1014_v12  ;;  %v1224_v25 = vsel %vm1203_vm6, %v1191_v30, %v1030_v32  ;;  %v1011_v12 = vsub.f32 %v3860_v1, %v979_v38  ;;  %v1010_v1 = vsub.f32 %v3858_v45, %v978_v60 }
 0x257   :  { %1982 = vxpose.xlu2.b32.cont [10/16] %v1981_v31, 128  ;;  %1391 = vmatpush.msra.mxu0 %v1208_v48  ;;  %v1027_v32 = vsub.f32 %v3859_v33, %v995_v37  ;;  %v1842_v51 = vsel %vm944_vm10, 1.0, %v3843_v54 }
 0x258   :  { %1855 = vmatpush.msra.mxu2 %v1208_v48  ;;  %1456 = vmatpush.msra.mxu1 %v1224_v25  ;;  %v1991_v55 = vpack.i.bf16 %v1842_v51, %v1826_v62 }
 0x259   :  { %1871 = vmatpush.msra.mxu3 %v1224_v25 }
 0x25b   :  { %v1945_v44 = vpop.permute.xlu0 %1944 }
 0x25c   :  { %v1947_v34 = vunpack.i.h.bf16 %v1945_v44  ;;  %v1946_v58 = vunpack.i.l.bf16 %v1945_v44 }
 0x25e   :  { %v1174_v7 = vsel %vm1170_vm3, %v981_v46, %v1946_v58  ;;  %v1190_v9 = vsel %vm1170_vm3, %v997_v19, %v1947_v34  ;;  %v1840_v46 = vsel %vm942_vm13, 1.0, %v3843_v54  ;;  %v1825_v19 = vsel %vm927_vm4, 1.0, %v3843_v54 }
 0x25f   :  { %1984 = vxpose.xlu2.b32.cont [11/16] %v1983_v52, 128  ;;  %v1207_v61 = vsel %vm1203_vm6, %v1174_v7, %v1013_v18  ;;  %v1223_v13 = vsel %vm1203_vm6, %v1190_v9, %v1029_v40  ;;  %v1987_v35 = vpack.i.bf16 %v1840_v46, %v1824_v20  ;;  %v1365_v20 = vld [vmem:[#allocation2 + $0x8] sm:$0xff] }
 0x260   :  { %1392 = vmatpush.msra.mxu0 %v1207_v61  ;;  %1856 = vmatpush.msra.mxu2 %v1207_v61 }
 0x261   :  { %1457 = vmatpush.msra.mxu1 %v1223_v13  ;;  %1872 = vmatpush.msra.mxu3 %v1223_v13 }
 0x262   :  { %1393 = vmatpush.msra.mxu0 %v1206_v11  ;;  %1857 = vmatpush.msra.mxu2 %v1206_v11 }
 0x263   :  { %1458 = vmatpush.msra.mxu1 %v1222_v4  ;;  %1873 = vmatpush.msra.mxu3 %v1222_v4  ;;  %v1955_v23 = vpop.permute.xlu1 %1954  ;;  %v1960_v50 = vpop.permute.xlu0 %1959 }
 0x264   :  { %v1957_v21 = vunpack.i.h.bf16 %v1955_v23  ;;  %v1956_v8 = vunpack.i.l.bf16 %v1955_v23  ;;  %v1962_v28 = vunpack.i.h.bf16 %v1960_v50  ;;  %v1961_v29 = vunpack.i.l.bf16 %v1960_v50 }
 0x266   :  { %v1172_v31 = vsel %vm1170_vm3, %v979_v38, %v1956_v8  ;;  %v1188_v47 = vsel %vm1170_vm3, %v995_v37, %v1957_v21  ;;  %v1171_v30 = vsel %vm1170_vm3, %v978_v60, %v1961_v29  ;;  %v1187_v33 = vsel %vm1170_vm3, %v994_v10, %v1962_v28 }
 0x267   :  { %1986 = vxpose.xlu2.b32.cont [12/16] %v1985_v43, 128  ;;  %v1205_v48 = vsel %vm1203_vm6, %v1172_v31, %v1011_v12  ;;  %v1221_v25 = vsel %vm1203_vm6, %v1188_v47, %v1027_v32  ;;  %v1204_v24 = vsel %vm1203_vm6, %v1171_v30, %v1010_v1  ;;  %v1220_v45 = vsel %vm1203_vm6, %v1187_v33, %v1026_v59  ;;  %vm943_vm6 = vmand %vm875_vm15, %vm911_vm0 }
 0x268   :  { %1394 = vmatpush.msra.mxu0 %v1205_v48  ;;  %1858 = vmatpush.msra.mxu2 %v1205_v48  ;;  %v1841_v53 = vsel %vm943_vm6, 1.0, %v3843_v54  ;;  %v1364_v48 = vld [vmem:[#allocation2] sm:$0xff] }
 0x269   :  { %1459 = vmatpush.msra.mxu1 %v1221_v25  ;;  %1874 = vmatpush.msra.mxu3 %v1221_v25  ;;  %v1989_v14 = vpack.i.bf16 %v1841_v53, %v1825_v19 }
 0x26a   :  { %1395 = vmatpush.msra.mxu0 %v1204_v24  ;;  %1859 = vmatpush.msra.mxu2 %v1204_v24 }
 0x26b   :  { %1460 = vmatpush.msra.mxu1 %v1220_v45  ;;  %1875 = vmatpush.msra.mxu3 %v1220_v45 }
 0x26f   :  { %1988 = vxpose.xlu2.b32.cont [13/16] %v1987_v35, 128 }
 0x277   :  { %1990 = vxpose.xlu2.b32.cont [14/16] %v1989_v14, 128 }
 0x27f   :  { %1992 = vxpose.xlu2.b32.cont [15/16] %v1991_v55, 128  ;;  %v1366_v55 = vld [vmem:[#allocation2 + $0x10] sm:$0xff] }
 0x287   :  { %1994 = vxpose.xlu2.b32.end [16/16] %v3902_v42, 128 }
 0x2a8   :  { %v1995_v0 = vpop.trf.xlu2 }
 0x2a9   :  { %v1996_v16 = vunpack.i.l.bf16 %v1995_v0  ;;  %v1999_v5 = vunpack.i.h.bf16 %v1995_v0 }
 0x2ab   :  { %1396 = vmatmul.f32.vlgmr.msra.gmra.mxu0 %v1996_v16  ;;  %1461 = vmatmul.f32.vlgmr.msra.gmra.mxu1 %v1999_v5  ;;  %v1367_v16 = vld [vmem:[#allocation2 + $0x18] sm:$0xff] }
 0x2b0   :  { %v2000_v36 = vpop.trf.xlu2 }
 0x2b1   :  { %v2001_v39 = vunpack.i.l.bf16 %v2000_v36  ;;  %v2004_v56 = vunpack.i.h.bf16 %v2000_v36 }
 0x2b3   :  { %1399 = vmatmul.f32.gmra.mxu0 %v2001_v39  ;;  %1464 = vmatmul.f32.gmra.mxu1 %v2004_v56 }
 0x2b8   :  { %v2005_v41 = vpop.trf.xlu2 }
 0x2b9   :  { %v2006_v44 = vunpack.i.l.bf16 %v2005_v41  ;;  %v2009_v18 = vunpack.i.h.bf16 %v2005_v41  ;;  %v1368_v41 = vld [vmem:[#allocation2 + $0x20] sm:$0xff] }
 0x2bb   :  { %1402 = vmatmul.f32.gmra.mxu0 %v2006_v44  ;;  %1467 = vmatmul.f32.gmra.mxu1 %v2009_v18 }
 0x2c0   :  { %v2010_v40 = vpop.trf.xlu2 }
 0x2c1   :  { %v2011_v3 = vunpack.i.l.bf16 %v2010_v40  ;;  %v2014_v34 = vunpack.i.h.bf16 %v2010_v40 }
 0x2c3   :  { %1405 = vmatmul.f32.gmra.mxu0 %v2011_v3  ;;  %1470 = vmatmul.f32.gmra.mxu1 %v2014_v34  ;;  %v1369_v34 = vld [vmem:[#allocation2 + $0x28] sm:$0xff] }
 0x2c8   :  { %v2015_v58 = vpop.trf.xlu2 }
 0x2c9   :  { %v2016_v52 = vunpack.i.l.bf16 %v2015_v58  ;;  %v2019_v27 = vunpack.i.h.bf16 %v2015_v58 }
 0x2cb   :  { %1408 = vmatmul.f32.gmra.mxu0 %v2016_v52  ;;  %1473 = vmatmul.f32.gmra.mxu1 %v2019_v27 }
 0x2d0   :  { %v2020_v7 = vpop.trf.xlu2 }
 0x2d1   :  { %v2021_v9 = vunpack.i.l.bf16 %v2020_v7  ;;  %v2024_v15 = vunpack.i.h.bf16 %v2020_v7 }
 0x2d3   :  { %1411 = vmatmul.f32.gmra.mxu0 %v2021_v9  ;;  %1476 = vmatmul.f32.gmra.mxu1 %v2024_v15  ;;  %v1370_v9 = vld [vmem:[#allocation2 + $0x30] sm:$0xff] }
 0x2d8   :  { %v2025_v63 = vpop.trf.xlu2 }
 0x2d9   :  { %v2026_v61 = vunpack.i.l.bf16 %v2025_v63  ;;  %v2029_v13 = vunpack.i.h.bf16 %v2025_v63 }
 0x2db   :  { %1414 = vmatmul.f32.gmra.mxu0 %v2026_v61  ;;  %1479 = vmatmul.f32.gmra.mxu1 %v2029_v13 }
 0x2e0   :  { %v2030_v17 = vpop.trf.xlu2 }
 0x2e1   :  { %v2031_v57 = vunpack.i.l.bf16 %v2030_v17  ;;  %v2034_v6 = vunpack.i.h.bf16 %v2030_v17  ;;  %v1371_v17 = vld [vmem:[#allocation2 + $0x38] sm:$0xff] }
 0x2e3   :  { %1417 = vmatmul.f32.gmra.mxu0 %v2031_v57  ;;  %1482 = vmatmul.f32.gmra.mxu1 %v2034_v6 }
 0x2e8   :  { %v2035_v11 = vpop.trf.xlu2 }
 0x2e9   :  { %v2036_v38 = vunpack.i.l.bf16 %v2035_v11  ;;  %v2039_v37 = vunpack.i.h.bf16 %v2035_v11 }
 0x2eb   :  { %1420 = vmatmul.f32.vlgmr.msra.gmra.mxu2 %v2036_v38  ;;  %1485 = vmatmul.f32.vlgmr.msra.gmra.mxu3 %v2039_v37  ;;  %v1372_v37 = vld [vmem:[#allocation2 + $0x40] sm:$0xff] }
 0x2f0   :  { %v2040_v4 = vpop.trf.xlu2 }
 0x2f1   :  { %v2041_v26 = vunpack.i.l.bf16 %v2040_v4  ;;  %v2044_v60 = vunpack.i.h.bf16 %v2040_v4 }
 0x2f3   :  { %1423 = vmatmul.f32.gmra.mxu2 %v2041_v26  ;;  %1488 = vmatmul.f32.gmra.mxu3 %v2044_v60 }
 0x2f8   :  { %v2045_v23 = vpop.trf.xlu2 }
 0x2f9   :  { %v2046_v50 = vunpack.i.l.bf16 %v2045_v23  ;;  %v2049_v2 = vunpack.i.h.bf16 %v2045_v23 }
 0x2fb   :  { %1426 = vmatmul.f32.gmra.mxu2 %v2046_v50  ;;  %1491 = vmatmul.f32.gmra.mxu3 %v2049_v2  ;;  %v1373_v50 = vld [vmem:[#allocation2 + $0x48] sm:$0xff] }
 0x300   :  { %v2050_v10 = vpop.trf.xlu2 }
 0x301   :  { %v2051_v21 = vunpack.i.l.bf16 %v2050_v10  ;;  %v2054_v8 = vunpack.i.h.bf16 %v2050_v10 }
 0x303   :  { %1429 = vmatmul.f32.gmra.mxu2 %v2051_v21  ;;  %1494 = vmatmul.f32.gmra.mxu3 %v2054_v8 }
 0x308   :  { %v2055_v28 = vpop.trf.xlu2 }
 0x309   :  { %v2056_v29 = vunpack.i.l.bf16 %v2055_v28  ;;  %v2059_v43 = vunpack.i.h.bf16 %v2055_v28 }
 0x30b   :  { %1432 = vmatmul.f32.gmra.mxu2 %v2056_v29  ;;  %1497 = vmatmul.f32.gmra.mxu3 %v2059_v43  ;;  %v1374_v29 = vld [vmem:[#allocation2 + $0x50] sm:$0xff] }
 0x310   :  { %v2060_v12 = vpop.trf.xlu2 }
 0x311   :  { %v2061_v32 = vunpack.i.l.bf16 %v2060_v12  ;;  %v2064_v31 = vunpack.i.h.bf16 %v2060_v12 }
 0x313   :  { %1435 = vmatmul.f32.gmra.mxu2 %v2061_v32  ;;  %1500 = vmatmul.f32.gmra.mxu3 %v2064_v31 }
 0x318   :  { %v2065_v47 = vpop.trf.xlu2 }
 0x319   :  { %v2066_v59 = vunpack.i.l.bf16 %v2065_v47  ;;  %v2069_v24 = vunpack.i.h.bf16 %v2065_v47 }
 0x31b   :  { %1438 = vmatmul.f32.gmra.mxu2 %v2066_v59  ;;  %1503 = vmatmul.f32.gmra.mxu3 %v2069_v24  ;;  %v1376_v24 = vld [vmem:[#allocation2 + $0x60] sm:$0xff] }
 0x320   :  { %v2070_v45 = vpop.trf.xlu2 }
 0x321   :  { %v2071_v54 = vunpack.i.l.bf16 %v2070_v45  ;;  %v2074_v51 = vunpack.i.h.bf16 %v2070_v45 }
 0x323   :  { %1441 = vmatmul.f32.gmra.mxu2 %v2071_v54  ;;  %1506 = vmatmul.f32.gmra.mxu3 %v2074_v51  ;;  %v1377_v51 = vld [vmem:[#allocation2 + $0x68] sm:$0xff] }
 0x328   :  { %v1397_v30 = vpop.f32.mrf.mxu0  ;;  %v1462_v25 = vpop.f32.mrf.mxu1 }
 0x329   :  { %v1463_v1 = vadd.f32 %v1462_v25, %v1397_v30  ;;  %v1375_v30 = vld [vmem:[#allocation2 + $0x58] sm:$0xff] }
 0x32b   :  { %v1510_v33 = vadd.f32 %v1463_v1, %v1364_v48 }
 0x32d   :  { %1527 = vst.msk [vmem:[#allocation2] sm:$0xff] %vm22_vm12, %v1510_v33 }
 0x330   :  { %v1400_v46 = vpop.f32.mrf.mxu0  ;;  %v1465_v35 = vpop.f32.mrf.mxu1 }
 0x331   :  { %v1466_v53 = vadd.f32 %v1465_v35, %v1400_v46 }
 0x333   :  { %v1511_v19 = vadd.f32 %v1466_v53, %v1365_v20 }
 0x334   :  { %v3562_v14 = vld [vmem:[#allocation2] sm:$0xff] }
 0x335   :  { %1528 = vst.msk [vmem:[#allocation2 + $0x8] sm:$0xff] %vm22_vm12, %v1511_v19  ;;  %1642 = vrot.lane.b32.xlu0 %v3562_v14, %s2095_s2  ;;  %1578 = vrot.lane.b32.xlu1 %v3562_v14, %s2096_s3 }
 0x338   :  { %v1403_v62 = vpop.f32.mrf.mxu0  ;;  %v1468_v22 = vpop.f32.mrf.mxu1 }
 0x339   :  { %v1469_v49 = vadd.f32 %v1468_v22, %v1403_v62 }
 0x33b   :  { %v1512_v42 = vadd.f32 %v1469_v49, %v1366_v55 }
 0x33c   :  { %v3583_v31 = vld [vmem:[#allocation2 + $0x8] sm:$0xff] }
 0x33d   :  { %1529 = vst.msk [vmem:[#allocation2 + $0x10] sm:$0xff] %vm22_vm12, %v1512_v42 }
 0x340   :  { %v1406_v0 = vpop.f32.mrf.mxu0  ;;  %v1471_v5 = vpop.f32.mrf.mxu1 }
 0x341   :  { %v1472_v36 = vadd.f32 %v1471_v5, %v1406_v0  ;;  %v1378_v5 = vld [vmem:[#allocation2 + $0x70] sm:$0xff] }
 0x343   :  { %v1513_v39 = vadd.f32 %v1472_v36, %v1367_v16 }
 0x344   :  { %v3599_v53 = vld [vmem:[#allocation2 + $0x10] sm:$0xff] }
 0x345   :  { %1530 = vst.msk [vmem:[#allocation2 + $0x18] sm:$0xff] %vm22_vm12, %v1513_v39 }
 0x348   :  { %v1409_v56 = vpop.f32.mrf.mxu0  ;;  %v1474_v44 = vpop.f32.mrf.mxu1 }
 0x349   :  { %v1475_v18 = vadd.f32 %v1474_v44, %v1409_v56 }
 0x34b   :  { %v1514_v40 = vadd.f32 %v1475_v18, %v1368_v41  ;;  %v1379_v18 = vld [vmem:[#allocation2 + $0x78] sm:$0xff] }
 0x34c   :  { %v3606_v19 = vld [vmem:[#allocation2 + $0x18] sm:$0xff] }
 0x34d   :  { %1531 = vst.msk [vmem:[#allocation2 + $0x20] sm:$0xff] %vm22_vm12, %v1514_v40 }
 0x350   :  { %v1412_v3 = vpop.f32.mrf.mxu0  ;;  %v1477_v58 = vpop.f32.mrf.mxu1 }
 0x351   :  { %v1478_v52 = vadd.f32 %v1477_v58, %v1412_v3 }
 0x353   :  { %v1515_v27 = vadd.f32 %v1478_v52, %v1369_v34 }
 0x354   :  { %v3619_v42 = vld [vmem:[#allocation2 + $0x20] sm:$0xff] }
 0x355   :  { %1532 = vst.msk [vmem:[#allocation2 + $0x28] sm:$0xff] %vm22_vm12, %v1515_v27 }
 0x358   :  { %v1415_v7 = vpop.f32.mrf.mxu0  ;;  %v1480_v15 = vpop.f32.mrf.mxu1 }
 0x359   :  { %v1481_v63 = vadd.f32 %v1480_v15, %v1415_v7 }
 0x35b   :  { %v1516_v61 = vadd.f32 %v1481_v63, %v1370_v9 }
 0x35c   :  { %v3632_v41 = vld [vmem:[#allocation2 + $0x28] sm:$0xff] }
 0x35d   :  { %1533 = vst.msk [vmem:[#allocation2 + $0x30] sm:$0xff] %vm22_vm12, %v1516_v61 }
 0x360   :  { %v1418_v13 = vpop.f32.mrf.mxu0  ;;  %v1483_v57 = vpop.f32.mrf.mxu1 }
 0x361   :  { %v1484_v6 = vadd.f32 %v1483_v57, %v1418_v13 }
 0x363   :  { %v1517_v11 = vadd.f32 %v1484_v6, %v1371_v17 }
 0x364   :  { %v1552_v52 = vld [vmem:[#allocation2 + $0x30] sm:$0xff] }
 0x365   :  { %1534 = vst.msk [vmem:[#allocation2 + $0x38] sm:$0xff] %vm22_vm12, %v1517_v11 }
 0x36c   :  { %v3648_v27 = vld [vmem:[#allocation2 + $0x38] sm:$0xff] }
 0x36e   :  { %v1421_v38 = vpop.f32.mrf.mxu2  ;;  %v1486_v4 = vpop.f32.mrf.mxu3 }
 0x36f   :  { %v1487_v26 = vadd.f32 %v1486_v4, %v1421_v38 }
 0x371   :  { %v1518_v60 = vadd.f32 %v1487_v26, %v1372_v37 }
 0x373   :  { %1535 = vst.msk [vmem:[#allocation2 + $0x40] sm:$0xff] %vm22_vm12, %v1518_v60 }
 0x376   :  { %v1424_v23 = vpop.f32.mrf.mxu2  ;;  %v1489_v2 = vpop.f32.mrf.mxu3 }
 0x377   :  { %v1490_v10 = vadd.f32 %v1489_v2, %v1424_v23 }
 0x379   :  { %v1519_v21 = vadd.f32 %v1490_v10, %v1373_v50 }
 0x37a   :  { %v3576_v8 = vld [vmem:[#allocation2 + $0x40] sm:$0xff] }
 0x37b   :  { %1594 = vrot.lane.b32.xlu0 %v3576_v8, %s2096_s3  ;;  %1658 = vrot.lane.b32.xlu1 %v3576_v8, %s2095_s2  ;;  %1536 = vst.msk [vmem:[#allocation2 + $0x48] sm:$0xff] %vm22_vm12, %v1519_v21 }
 0x37e   :  { %v1427_v28 = vpop.f32.mrf.mxu2  ;;  %v1492_v43 = vpop.f32.mrf.mxu3 }
 0x37f   :  { %v1493_v12 = vadd.f32 %v1492_v43, %v1427_v28 }
 0x381   :  { %v1520_v32 = vadd.f32 %v1493_v12, %v1374_v29 }
 0x382   :  { %v3590_v1 = vld [vmem:[#allocation2 + $0x48] sm:$0xff] }
 0x383   :  { %1580 = vrot.lane.b32.xlu0 %v3583_v31, %s2096_s3  ;;  %1644 = vrot.lane.b32.xlu1 %v3583_v31, %s2095_s2  ;;  %1537 = vst.msk [vmem:[#allocation2 + $0x50] sm:$0xff] %vm22_vm12, %v1520_v32 }
 0x386   :  { %v1430_v47 = vpop.f32.mrf.mxu2  ;;  %v1495_v48 = vpop.f32.mrf.mxu3 }
 0x387   :  { %v1496_v25 = vadd.f32 %v1495_v48, %v1430_v47 }
 0x389   :  { %v1521_v33 = vadd.f32 %v1496_v25, %v1375_v30 }
 0x38a   :  { %v3597_v20 = vld [vmem:[#allocation2 + $0x50] sm:$0xff] }
 0x38b   :  { %1596 = vrot.lane.b32.xlu0 %v3590_v1, %s2096_s3  ;;  %1660 = vrot.lane.b32.xlu1 %v3590_v1, %s2095_s2  ;;  %1538 = vst.msk [vmem:[#allocation2 + $0x58] sm:$0xff] %vm22_vm12, %v1521_v33 }
 0x38e   :  { %v1433_v59 = vpop.f32.mrf.mxu2  ;;  %v1498_v45 = vpop.f32.mrf.mxu3 }
 0x38f   :  { %v1499_v46 = vadd.f32 %v1498_v45, %v1433_v59 }
 0x391   :  { %v1522_v35 = vadd.f32 %v1499_v46, %v1376_v24 }
 0x392   :  { %v3613_v49 = vld [vmem:[#allocation2 + $0x58] sm:$0xff] }
 0x393   :  { %1598 = vrot.lane.b32.xlu0 %v3597_v20, %s2096_s3  ;;  %1582 = vrot.lane.b32.xlu1 %v3599_v53, %s2096_s3  ;;  %1539 = vst.msk [vmem:[#allocation2 + $0x60] sm:$0xff] %vm22_vm12, %v1522_v35 }
 0x396   :  { %v1436_v54 = vpop.f32.mrf.mxu2  ;;  %v1501_v62 = vpop.f32.mrf.mxu3 }
 0x397   :  { %v1502_v55 = vadd.f32 %v1501_v62, %v1436_v54 }
 0x399   :  { %v1523_v22 = vadd.f32 %v1502_v55, %v1377_v51 }
 0x39a   :  { %v3625_v0 = vld [vmem:[#allocation2 + $0x60] sm:$0xff] }
 0x39b   :  { %1584 = vrot.lane.b32.xlu0 %v3606_v19, %s2096_s3  ;;  %1646 = vrot.lane.b32.xlu1 %v3599_v53, %s2095_s2  ;;  %1540 = vst.msk [vmem:[#allocation2 + $0x68] sm:$0xff] %vm22_vm12, %v1523_v22 }
 0x39e   :  { %v1439_v16 = vpop.f32.mrf.mxu2  ;;  %v1504_v36 = vpop.f32.mrf.mxu3 }
 0x39f   :  { %v1505_v39 = vadd.f32 %v1504_v36, %v1439_v16 }
 0x3a1   :  { %v1524_v56 = vadd.f32 %v1505_v39, %v1378_v5 }
 0x3a2   :  { %v3639_v58 = vld [vmem:[#allocation2 + $0x68] sm:$0xff] }
 0x3a3   :  { %1600 = vrot.lane.b32.xlu0 %v3613_v49, %s2096_s3  ;;  %1662 = vrot.lane.b32.xlu1 %v3597_v20, %s2095_s2  ;;  %1541 = vst.msk [vmem:[#allocation2 + $0x70] sm:$0xff] %vm22_vm12, %v1524_v56 }
 0x3a6   :  { %v1442_v44 = vpop.f32.mrf.mxu2  ;;  %v1507_v40 = vpop.f32.mrf.mxu3 }
 0x3a7   :  { %v1508_v3 = vadd.f32 %v1507_v40, %v1442_v44  ;;  %v1643_v15 = vpop.permute.xlu0 %1642  ;;  %v1579_v63 = vpop.permute.xlu1 %1578 }
 0x3a9   :  { %v1525_v34 = vadd.f32 %v1508_v3, %v1379_v18 }
 0x3aa   :  { %v3653_v7 = vld [vmem:[#allocation2 + $0x70] sm:$0xff] }
 0x3ab   :  { %1586 = vrot.lane.b32.xlu0 %v3619_v42, %s2096_s3  ;;  %1648 = vrot.lane.b32.xlu1 %v3606_v19, %s2095_s2  ;;  %1542 = vst.msk [vmem:[#allocation2 + $0x78] sm:$0xff] %vm22_vm12, %v1525_v34 }
 0x3b2   :  { %v3659_v9 = vld [vmem:[#allocation2 + $0x78] sm:$0xff] }
 0x3b3   :  { %1602 = vrot.lane.b32.xlu0 %v3625_v0, %s2096_s3  ;;  %1664 = vrot.lane.b32.xlu1 %v3613_v49, %s2095_s2 }
 0x3bb   :  { %1588 = vrot.lane.b32.xlu0 %v3632_v41, %s2096_s3  ;;  %1650 = vrot.lane.b32.xlu1 %v3619_v42, %s2095_s2 }
 0x3c3   :  { %1604 = vrot.lane.b32.xlu0 %v3639_v58, %s2096_s3  ;;  %1666 = vrot.lane.b32.xlu1 %v3625_v0, %s2095_s2 }
 0x3cb   :  { %1590 = vrot.lane.b32.xlu0 %v1552_v52, %s2096_s3  ;;  %1652 = vrot.lane.b32.xlu1 %v3632_v41, %s2095_s2 }
 0x3d3   :  { %1592 = vrot.lane.b32.xlu0 %v3648_v27, %s2096_s3  ;;  %1654 = vrot.lane.b32.xlu1 %v1552_v52, %s2095_s2 }
 0x3db   :  { %1606 = vrot.lane.b32.xlu0 %v3653_v7, %s2096_s3  ;;  %1656 = vrot.lane.b32.xlu1 %v3648_v27, %s2095_s2 }
 0x3e3   :  { %1608 = vrot.lane.b32.xlu0 %v3659_v9, %s2096_s3  ;;  %1668 = vrot.lane.b32.xlu1 %v3639_v58, %s2095_s2 }
 0x3eb   :  { %1672 = vrot.lane.b32.xlu0 %v3659_v9, %s2095_s2  ;;  %1670 = vrot.lane.b32.xlu1 %v3653_v7, %s2095_s2 }
 0x3ed   :  { %v1595_v61 = vpop.permute.xlu0 %1594  ;;  %v3669_v13 = vpop.permute.xlu1 %1658 }
 0x3ee   :  { %v3672_v17 = vadd.f32 %v1595_v61, %v3576_v8 }
 0x3f0   :  { %v1698_v57 = vsub.f32 %v3672_v17, %v3669_v13 }
 0x3f5   :  { %v1581_v6 = vpop.permute.xlu0 %1580  ;;  %v1645_v11 = vpop.permute.xlu1 %1644 }
 0x3f6   :  { %v1627_v38 = vadd.f32 %v1581_v6, %v3583_v31 }
 0x3f8   :  { %v1691_v37 = vsub.f32 %v1627_v38, %v1645_v11 }
 0x3fa   :  { %v1707_v54 = vand.u32 2147483647, %v1691_v37 }
 0x3fc   :  { %v1723_v36 = vsel %vm1170_vm3, %v1707_v54, 0.0 }
 0x3fd   :  { %v1597_v4 = vpop.permute.xlu0 %1596  ;;  %v1661_v26 = vpop.permute.xlu1 %1660 }
 0x3fe   :  { %v1635_v60 = vadd.f32 %v1597_v4, %v3590_v1  ;;  %v1626_v1 = vadd.f32 %v1579_v63, %v3562_v14 }
 0x400   :  { %v1699_v23 = vsub.f32 %v1635_v60, %v1661_v26  ;;  %v1690_v46 = vsub.f32 %v1626_v1, %v1643_v15 }
 0x402   :  { %v1706_v55 = vand.u32 2147483647, %v1690_v46 }
 0x404   :  { %v1722_v18 = vsel %vm1170_vm3, %v1706_v55, 0.0 }
 0x405   :  { %v1599_v50 = vpop.permute.xlu0 %1598  ;;  %v1583_v2 = vpop.permute.xlu1 %1582 }
 0x406   :  { %v1636_v8 = vadd.f32 %v1599_v50, %v3597_v20  ;;  %v1628_v59 = vadd.f32 %v1583_v2, %v3599_v53  ;;  %v1714_v2 = vand.u32 2147483647, %v1698_v57 }
 0x40d   :  { %v1585_v10 = vpop.permute.xlu0 %1584  ;;  %v1647_v21 = vpop.permute.xlu1 %1646 }
 0x40e   :  { %v1629_v20 = vadd.f32 %v1585_v10, %v3606_v19  ;;  %v1692_v35 = vsub.f32 %v1628_v59, %v1647_v21 }
 0x410   :  { %v1708_v22 = vand.u32 2147483647, %v1692_v35 }
 0x412   :  { %v1725_v19 = vsel %vm1170_vm3, %v1708_v22, 0.0 }
 0x415   :  { %v1601_v28 = vpop.permute.xlu0 %1600  ;;  %v1663_v29 = vpop.permute.xlu1 %1662 }
 0x416   :  { %v1700_v43 = vsub.f32 %v1636_v8, %v1663_v29  ;;  %v1637_v10 = vadd.f32 %v1601_v28, %v3613_v49  ;;  %v1715_v29 = vand.u32 2147483647, %v1699_v23 }
 0x418   :  { %v1716_v1 = vand.u32 2147483647, %v1700_v43  ;;  %v1739_v13 = vsel %vm1170_vm3, %v1715_v29, 0.0 }
 0x41a   :  { %v1741_v23 = vsel %vm1170_vm3, %v1716_v1, 0.0 }
 0x41d   :  { %v1587_v12 = vpop.permute.xlu0 %1586  ;;  %v1649_v32 = vpop.permute.xlu1 %1648 }
 0x41e   :  { %v1630_v51 = vadd.f32 %v1587_v12, %v3619_v42  ;;  %v1693_v62 = vsub.f32 %v1629_v20, %v1649_v32  ;;  %v1724_v42 = vadd.f32 %v1723_v36, %v1722_v18 }
 0x420   :  { %v1709_v14 = vand.u32 2147483647, %v1693_v62  ;;  %v1726_v63 = vadd.f32 %v1725_v19, %v1724_v42 }
 0x422   :  { %v1727_v34 = vsel %vm1170_vm3, %v1709_v14, 0.0 }
 0x423   :  { %v1728_v6 = vadd.f32 %v1727_v34, %v1726_v63 }
 0x425   :  { %v1603_v47 = vpop.permute.xlu0 %1602  ;;  %v1665_v30 = vpop.permute.xlu1 %1664 }
 0x426   :  { %v1638_v12 = vadd.f32 %v1603_v47, %v3625_v0  ;;  %v1701_v32 = vsub.f32 %v1637_v10, %v1665_v30 }
 0x428   :  { %v1717_v17 = vand.u32 2147483647, %v1701_v32 }
 0x42a   :  { %v1743_v30 = vsel %vm1170_vm3, %v1717_v17, 0.0 }
 0x42d   :  { %v1589_v31 = vpop.permute.xlu0 %1588  ;;  %v1651_v48 = vpop.permute.xlu1 %1650 }
 0x42e   :  { %v1631_v16 = vadd.f32 %v1589_v31, %v3632_v41  ;;  %v1694_v5 = vsub.f32 %v1630_v51, %v1651_v48  ;;  %v1737_v48 = vsel %vm1170_vm3, %v1714_v2, 0.0 }
 0x430   :  { %v1710_v40 = vand.u32 2147483647, %v1694_v5 }
 0x432   :  { %v1729_v41 = vsel %vm1170_vm3, %v1710_v40, 0.0 }
 0x433   :  { %v1730_v38 = vadd.f32 %v1729_v41, %v1728_v6 }
 0x435   :  { %v1605_v25 = vpop.permute.xlu0 %1604  ;;  %v1667_v33 = vpop.permute.xlu1 %1666 }
 0x436   :  { %v1702_v59 = vsub.f32 %v1638_v12, %v1667_v33  ;;  %v1639_v49 = vadd.f32 %v1605_v25, %v3639_v58 }
 0x438   :  { %v1718_v0 = vand.u32 2147483647, %v1702_v59 }
 0x43a   :  { %v1745_v43 = vsel %vm1170_vm3, %v1718_v0, 0.0 }
 0x43d   :  { %v1591_v24 = vpop.permute.xlu0 %1590  ;;  %v1653_v45 = vpop.permute.xlu1 %1652 }
 0x43e   :  { %v1632_v39 = vadd.f32 %v1591_v24, %v1552_v52  ;;  %v1695_v53 = vsub.f32 %v1631_v16, %v1653_v45 }
 0x440   :  { %v1711_v15 = vand.u32 2147483647, %v1695_v53 }
 0x442   :  { %v1731_v52 = vsel %vm1170_vm3, %v1711_v15, 0.0 }
 0x443   :  { %v1732_v50 = vadd.f32 %v1731_v52, %v1730_v38 }
 0x445   :  { %v1593_v56 = vpop.permute.xlu0 %1592  ;;  %v1655_v44 = vpop.permute.xlu1 %1654 }
 0x446   :  { %v1696_v3 = vsub.f32 %v1632_v39, %v1655_v44  ;;  %v1633_v11 = vadd.f32 %v1593_v56, %v3648_v27 }
 0x448   :  { %v1712_v61 = vand.u32 2147483647, %v1696_v3 }
 0x44a   :  { %v1733_v26 = vsel %vm1170_vm3, %v1712_v61, 0.0 }
 0x44b   :  { %v1734_v8 = vadd.f32 %v1733_v26, %v1732_v50 }
 0x44d   :  { %v1607_v37 = vpop.permute.xlu0 %1606  ;;  %v1657_v4 = vpop.permute.xlu1 %1656 }
 0x44e   :  { %v1697_v60 = vsub.f32 %v1633_v11, %v1657_v4  ;;  %v1640_v33 = vadd.f32 %v1607_v37, %v3653_v7 }
 0x450   :  { %v1713_v21 = vand.u32 2147483647, %v1697_v60 }
 0x452   :  { %v1735_v27 = vsel %vm1170_vm3, %v1713_v21, 0.0 }
 0x453   :  { %v1736_v31 = vadd.f32 %v1735_v27, %v1734_v8 }
 0x455   :  { %v1738_v24 = vadd.f32 %v1737_v48, %v1736_v31  ;;  %v1609_v45 = vpop.permute.xlu0 %1608  ;;  %v1669_v46 = vpop.permute.xlu1 %1668 }
 0x456   :  { %v1703_v28 = vsub.f32 %v1639_v49, %v1669_v46  ;;  %v1641_v35 = vadd.f32 %v1609_v45, %v3659_v9 }
 0x457   :  { %v1740_v57 = vadd.f32 %v1739_v13, %v1738_v24 }
 0x458   :  { %v1719_v54 = vand.u32 2147483647, %v1703_v28 }
 0x459   :  { %v1742_v47 = vadd.f32 %v1741_v23, %v1740_v57 }
 0x45a   :  { %v1747_v22 = vsel %vm1170_vm3, %v1719_v54, 0.0 }
 0x45b   :  { %v1744_v20 = vadd.f32 %v1743_v30, %v1742_v47 }
 0x45d   :  { %v1746_v51 = vadd.f32 %v1745_v43, %v1744_v20  ;;  %v1673_v62 = vpop.permute.xlu0 %1672  ;;  %v1671_v55 = vpop.permute.xlu1 %1670 }
 0x45e   :  { %v1705_v58 = vsub.f32 %v1641_v35, %v1673_v62  ;;  %v1704_v25 = vsub.f32 %v1640_v33, %v1671_v55 }
 0x45f   :  { %v1748_v36 = vadd.f32 %v1747_v22, %v1746_v51 }
 0x460   :  { %v1721_v16 = vand.u32 2147483647, %v1705_v58  ;;  %v1720_v5 = vand.u32 2147483647, %v1704_v25 }
 0x462   :  { %v1749_v14 = vsel %vm1170_vm3, %v1720_v5, 0.0  ;;  %v1751_v53 = vsel %vm1170_vm3, %v1721_v16, 0.0 }
 0x463   :  { %v1750_v39 = vadd.f32 %v1749_v14, %v1748_v36 }
 0x465   :  { %v1752_v56 = vadd.f32 %v1751_v53, %v1750_v39 }
 0x467   :  { %1753 = vadd.xlane.f32.xlu1 %v1752_v56 }
 0x4da   :  { %v1754_v7 = vpop.xlane.xlu1 %1753 }
 0x4db   :  { %v1755_v9 = vrot.slane %v1754_v7, 4 }
 0x4dd   :  { %v1756_v44 = vadd.f32 %v1755_v9, %v1754_v7 }
 0x4df   :  { %v1757_v18 = vrot.slane %v1756_v44, 2 }
 0x4e1   :  { %v1758_v19 = vadd.f32 %v1757_v18, %v1756_v44 }
 0x4e3   :  { %v1759_v40 = vrot.slane %v1758_v19, 1 }
 0x4e5   :  { %v1760_v3 = vadd.f32 %v1759_v40, %v1758_v19 }
 0x4e7   :  { %1876 = vpush %v1760_v3 }
 0x518   :  { %s1877_s22 = spop %1876 }
 0x519   :  { %s1762_s23 = smul.f32 0.00390625, %s1877_s22 }
 0x51b   :  { %1764 = sst [smem:[#allocation3]] %s1762_s23 }
 0x51c   :  { %1773 = dma.smem_to_hbm %s2097_s24, 16, %s1771_s21, [#allocation4]  }
 0x51d   :  { %2091 = dma.done.wait [#allocation4], 16  }
 0x51e   :  { %2092 = vsyncadd [#allocation4], 4294967280 }
 0x51f   :  { %1778 = sfence }
 0x520   :  { %1779 = vsyncpa [#allocation4], 1 }

</bundles_post_ra>
